<compile_context>
chip_gen: v5e
topology: v5e:2x2
jax: 0.10.0
libtpu: 0.0.40
codegen_flags: <defaults>
</compile_context>

<pallas_src>
import functools

import jax
import jax.numpy as jnp
import numpy as np
from jax import lax
from jax.experimental import pallas as pl

IMAGE_SIZE = 14
KSIZE = 4
PAD = IMAGE_SIZE % 4          # = 2, as in the PyTorch module
POOL = 2
NB_OUT_1 = 4
NB_OUT_2 = 8
NB_HIDDEN = 32
NB_CLASSES = 10
BN_EPS = 1e-5

CONV1_OUT = IMAGE_SIZE + 2 * PAD - KSIZE + 1     # 15
H1 = CONV1_OUT // POOL                           # 7  (floor-mode max_pool2d)
CONV2_OUT = H1 + 2 * PAD - KSIZE + 1             # 8
H2 = CONV2_OUT // POOL                           # 4
S1 = H1 * H1                                     # 49 block-1 outputs per image
S2 = H2 * H2                                     # 16 block-2 outputs per image
NK = KSIZE * KSIZE                               # 16 kernel taps
NOFF = POOL * POOL                               # 4 pool offsets
FLAT = NB_OUT_2 * S2                             # 128 fc1 input features


# ------------------------------ fused kernel ------------------------------- #

def _siamese_fused_kernel(p1t_ref, w1t_ref, b1_ref, g1_ref, be1_ref,
                          selt_ref, w2flat_ref, b2_ref, dselc_ref, mflatc_ref,
                          fc1wt_ref, fc1b_ref, fc2wt_ref, fc2b_ref, o_ref,
                          *, m1, m1p, ncol2, batch):
    f32 = jnp.float32

    # ---- block 1: relu(maxpool(conv1(x))), then BatchNorm2d (batch stats) ----
    # One matmul over all 4 pool offsets: (C1, NK) @ (NK, NOFF*m1p).
    y1all = jnp.dot(w1t_ref[...], p1t_ref[...], preferred_element_type=f32)
    acc = y1all[:, 0:m1p]
    for off in range(1, NOFF):                       # max over the 2x2 pool window
        acc = jnp.maximum(acc, y1all[:, off * m1p:(off + 1) * m1p])
    acc = jnp.maximum(acc + b1_ref[...], 0.0)        # bias hoisted out of the max

    # BN over (N, H, W) == lane reduction over the valid B*S1 columns; mask from iota.
    mask = (lax.broadcasted_iota(jnp.int32, (1, m1p), 1) < m1).astype(f32)
    inv_n = 1.0 / float(m1)
    mean = jnp.sum(acc * mask, axis=1, keepdims=True) * inv_n
    cent = (acc - mean) * mask                       # reused for var AND normalize
    var = jnp.sum(cent * cent, axis=1, keepdims=True) * inv_n
    # Final *mask zeroes the lane-padding columns exactly (no downstream reliance on
    # selt's all-zero rows).
    y1 = (g1_ref[...] * cent * lax.rsqrt(var + BN_EPS) + be1_ref[...]) * mask  # (C1, m1p)

    # ---- block 2: relu(maxpool(conv2(y1))) ----
    # selt is stored bf16 (exact 0/1); cast to f32 so the matmul keeps y1 exact.
    selt = selt_ref[...].astype(f32)                                   # (m1p, NK*ncol2)
    u = jnp.dot(y1, selt, preferred_element_type=f32)                  # (C1, NK*ncol2)
    # Lane-aligned slices -> sublane concat -> single K = NK*C1 = 64 matmul.
    u2 = jnp.concatenate(
        [u[:, k * ncol2:(k + 1) * ncol2] for k in range(NK)], axis=0)  # (NK*C1, ncol2)
    z = jnp.dot(w2flat_ref[...], u2, preferred_element_type=f32)       # (C2, ncol2)
    pool_w = ncol2 // NOFF                           # B*S2 columns per pool offset
    acc2 = z[:, 0:pool_w]
    for off in range(1, NOFF):
        acc2 = jnp.maximum(acc2, z[:, off * pool_w:(off + 1) * pool_w])
    y2 = jnp.maximum(acc2 + b2_ref[...], 0.0)        # (C2, B*S2)

    # ---- flatten to PyTorch (b, c*S2 + p) order: one matmul + one masked reduce ----
    g = jnp.dot(y2, dselc_ref[...], preferred_element_type=f32)        # (C2, B*FLAT)
    flat_row = jnp.sum(g * mflatc_ref[...], axis=0, keepdims=True)     # (1, B*FLAT)
    flat = jnp.concatenate(
        [flat_row[:, b * FLAT:(b + 1) * FLAT] for b in range(batch)], axis=0)  # (B, FLAT)

    # ---- MLP: fc2(relu(fc1(flat))) ----
    h = jnp.maximum(
        jnp.dot(flat, fc1wt_ref[...], preferred_element_type=f32) + fc1b_ref[...], 0.0)
    o_ref[...] = jnp.dot(h, fc2wt_ref[...], preferred_element_type=f32) + fc2b_ref[...]


# ------------------------- host-side constant tables ----------------------- #

def _build_constants(batch):
    m1 = batch * S1
    m1p = ((m1 + 127) // 128) * 128                  # pad block-1 columns to a lane tile
    ncol2 = NOFF * batch * S2                        # block-2 (offset, b, spatial) columns
    padw = IMAGE_SIZE + 2 * PAD
    img_stride = padw * padw

    # block-1 im2col as ONE gather into the flattened zero-padded batch image.
    # Lane-padding columns stay 0 -> xpad.flat[0], which is a padding pixel (== 0).
    idx1 = np.zeros((NK, NOFF * m1p), dtype=np.int32)
    # block-2 im2col 0/1 selection (rows >= m1 and out-of-range taps stay all-zero).
    selt = np.zeros((m1p, NK * ncol2), dtype=np.float32)
    for ky in range(KSIZE):
        for kx in range(KSIZE):
            k = ky * KSIZE + kx
            for dy in range(POOL):
                for dx in range(POOL):
                    off = dy * POOL + dx
                    for b in range(batch):
                        # block-1: indices into the padded (18x18) image of batch b
                        for oh in range(H1):
                            for ow in range(H1):
                                r = POOL * oh + dy + ky
                                c = POOL * ow + dx + kx
                                idx1[k, off * m1p + b * S1 + oh * H1 + ow] = (
                                    b * img_stride + r * padw + c)
                        # block-2: gather of y1 columns (missing entries == zero padding)
                        for i in range(H2):
                            for j in range(H2):
                                oh = POOL * i + dy + ky - PAD
                                ow = POOL * j + dx + kx - PAD
                                if 0 <= oh < H1 and 0 <= ow < H1:
                                    row = b * S1 + oh * H1 + ow
                                    col = (k * ncol2 + off * batch * S2
                                           + b * S2 + i * H2 + j)
                                    selt[row, col] = 1.0

    # fused flatten constants: flat[b, c*S2 + p] = y2[c, b*S2 + p]
    dselc = np.zeros((batch * S2, batch * FLAT), dtype=np.float32)
    mflatc = np.zeros((NB_OUT_2, batch * FLAT), dtype=np.float32)
    for b in range(batch):
        for c in range(NB_OUT_2):
            for p in range(S2):
                dselc[b * S2 + p, b * FLAT + c * S2 + p] = 1.0
            mflatc[c, b * FLAT + c * S2: b * FLAT + (c + 1) * S2] = 1.0

    return dict(idx1=idx1, selt=selt, dselc=dselc, mflatc=mflatc,
                m1=m1, m1p=m1p, ncol2=ncol2)


def prepare_params(p):
    """One-time weight re-layout (no per-call transposes in the forward path)."""
    return dict(
        w1t=p["conv1_w"].astype(jnp.float32).reshape(NB_OUT_1, NK),       # (co, ky*4+kx)
        b1=p["conv1_b"].astype(jnp.float32).reshape(NB_OUT_1, 1),
        g1=p["bn1_gamma"].astype(jnp.float32).reshape(NB_OUT_1, 1),
        be1=p["bn1_beta"].astype(jnp.float32).reshape(NB_OUT_1, 1),
        # (co, ky, kx, ci) -> (co, k*C1 + ci), matching the in-kernel sublane concat.
        w2flat=jnp.transpose(p["conv2_w"].astype(jnp.float32),
                             (0, 2, 3, 1)).reshape(NB_OUT_2, NK * NB_OUT_1),
        b2=p["conv2_b"].astype(jnp.float32).reshape(NB_OUT_2, 1),
        fc1wt=p["fc1_w"].astype(jnp.float32).T,                           # (128, 32)
        fc1b=p["fc1_b"].astype(jnp.float32).reshape(1, NB_HIDDEN),
        fc2wt=p["fc2_w"].astype(jnp.float32).T,                           # (32, 10)
        fc2b=p["fc2_b"].astype(jnp.float32).reshape(1, NB_CLASSES),
    )


def make_siamese_forward(batch):
    consts = _build_constants(batch)
    m1, m1p, ncol2 = consts["m1"], consts["m1p"], consts["ncol2"]
    idx1 = jnp.asarray(consts["idx1"].reshape(-1))                       # one-gather table
    selt = jnp.asarray(consts["selt"], dtype=jnp.bfloat16)               # 0/1 -> lossless bf16
    dselc = jnp.asarray(consts["dselc"])
    mflatc = jnp.asarray(consts["mflatc"])

    kernel = functools.partial(_siamese_fused_kernel, m1=m1, m1p=m1p,
                               ncol2=ncol2, batch=batch)
    fused = pl.pallas_call(          # grid-less: whole arrays resident in VMEM (~0.7 MiB)
        kernel,
        out_shape=jax.ShapeDtypeStruct((batch, NB_CLASSES), jnp.float32),
    )

    @jax.jit
    def forward(x_nchw, prep):
        # thin XLA glue: zero-pad + ONE gather produces p1t directly as (NK, NOFF*m1p)
        xflat = jnp.pad(x_nchw.astype(jnp.float32),
                        ((0, 0), (0, 0), (PAD, PAD), (PAD, PAD))).reshape(-1)
        p1t = jnp.take(xflat, idx1).reshape(NK, NOFF * m1p)
        return fused(p1t, prep["w1t"], prep["b1"], prep["g1"], prep["be1"],
                     selt, prep["w2flat"], prep["b2"], dselc, mflatc,
                     prep["fc1wt"], prep["fc1b"], prep["fc2wt"], prep["fc2b"])

    return forward


# ------------------------- params + pure-JAX reference --------------------- #

def init_params(key):
    ks = jax.random.split(key, 10)
    r = lambda k, s, scale=0.1: scale * jax.random.normal(k, s, dtype=jnp.float32)
    return dict(
        conv1_w=r(ks[0], (NB_OUT_1, 1, KSIZE, KSIZE)),
        conv1_b=r(ks[1], (NB_OUT_1,)),
        conv2_w=r(ks[2], (NB_OUT_2, NB_OUT_1, KSIZE, KSIZE)),
        conv2_b=r(ks[3], (NB_OUT_2,)),
        bn1_gamma=1.0 + r(ks[4], (NB_OUT_1,)),
        bn1_beta=r(ks[5], (NB_OUT_1,)),
        fc1_w=r(ks[6], (NB_HIDDEN, NB_OUT_2 * H2 * H2)),
        fc1_b=r(ks[7], (NB_HIDDEN,)),
        fc2_w=r(ks[8], (NB_CLASSES, NB_HIDDEN)),
        fc2_b=r(ks[9], (NB_CLASSES,)),
    )


def reference_forward(x, p):
    dn = ("NCHW", "OIHW", "NCHW")

    def conv(x, w, b):
        y = lax.conv_general_dilated(x, w, (1, 1), [(PAD, PAD), (PAD, PAD)],
                                     dimension_numbers=dn)
        return y + b[None, :, None, None]

    def maxpool(x):
        return lax.reduce_window(x, -jnp.inf, lax.max,
                                 (1, 1, 2, 2), (1, 1, 2, 2), "VALID")

    y = jax.nn.relu(maxpool(conv(x, p["conv1_w"], p["conv1_b"])))
    mean = y.mean(axis=(0, 2, 3), keepdims=True)
    var = ((y - mean) ** 2).mean(axis=(0, 2, 3), keepdims=True)
    y = (p["bn1_gamma"][None, :, None, None] * (y - mean)
         / jnp.sqrt(var + BN_EPS) + p["bn1_beta"][None, :, None, None])
    y = jax.nn.relu(maxpool(conv(y, p["conv2_w"], p["conv2_b"])))
    y = y.reshape(y.shape[0], -1)
    y = jax.nn.relu(y @ p["fc1_w"].T + p["fc1_b"])
    return y @ p["fc2_w"].T + p["fc2_b"]


if __name__ == "__main__":
    key = jax.random.PRNGKey(0)
    kx, kp = jax.random.split(key)
    batch = 2
    x = jax.random.normal(kx, (batch, 1, IMAGE_SIZE, IMAGE_SIZE), dtype=jnp.float32)
    params = init_params(kp)

    prep = prepare_params(params)                 # one-time weight re-layout
    forward = make_siamese_forward(batch)

    out = jax.block_until_ready(forward(x, prep))
    ref = jax.block_until_ready(reference_forward(x, params))

    assert out.shape == (batch, NB_CLASSES)
    np.testing.assert_allclose(np.asarray(out), np.asarray(ref),
                               rtol=1e-4, atol=1e-4)
    print("KERNEL_OK")
</pallas_src>

<mosaic_0001>
module attributes {stable_mosaic.version = 11 : i64} {
  func.func @_siamese_fused_kernel(%arg0: memref<16x512xf32, #tpu.memory_space<vmem>>, %arg1: memref<4x16xf32, #tpu.memory_space<vmem>>, %arg2: memref<4x1xf32, #tpu.memory_space<vmem>>, %arg3: memref<4x1xf32, #tpu.memory_space<vmem>>, %arg4: memref<4x1xf32, #tpu.memory_space<vmem>>, %arg5: memref<128x2048xbf16, #tpu.memory_space<vmem>>, %arg6: memref<8x64xf32, #tpu.memory_space<vmem>>, %arg7: memref<8x1xf32, #tpu.memory_space<vmem>>, %arg8: memref<32x256xf32, #tpu.memory_space<vmem>>, %arg9: memref<8x256xf32, #tpu.memory_space<vmem>>, %arg10: memref<128x32xf32, #tpu.memory_space<vmem>>, %arg11: memref<1x32xf32, #tpu.memory_space<vmem>>, %arg12: memref<32x10xf32, #tpu.memory_space<vmem>>, %arg13: memref<1x10xf32, #tpu.memory_space<vmem>>, %arg14: memref<2x10xf32, #tpu.memory_space<vmem>>) attributes {dimension_semantics = [], scalar_prefetch = 0 : i64, scratch_operands = 0 : i64, tpu.core_type = #tpu.core_type<tc>} {
    %c0 = arith.constant 0 : index
    %c0_0 = arith.constant 0 : index
    %0 = vector.load %arg1[%c0, %c0_0] : memref<4x16xf32, #tpu.memory_space<vmem>>, vector<4x16xf32>
    %c0_1 = arith.constant 0 : index
    %c0_2 = arith.constant 0 : index
    %1 = vector.load %arg0[%c0_1, %c0_2] : memref<16x512xf32, #tpu.memory_space<vmem>>, vector<16x512xf32>
    %cst = arith.constant dense<0.000000e+00> : vector<4x512xf32>
    %2 = tpu.matmul %0, %1, %cst {dimension_numbers = #tpu.dot_dimension_numbers<[1], [0], [0], [1], [0, 0, 1, 1], [], []>} : vector<4x16xf32>, vector<16x512xf32>, vector<4x512xf32> -> vector<4x512xf32>
    %3 = vector.extract_strided_slice %2 {offsets = [0, 0], sizes = [4, 128], strides = [1, 1]} : vector<4x512xf32> to vector<4x128xf32>
    %4 = vector.extract_strided_slice %2 {offsets = [0, 128], sizes = [4, 128], strides = [1, 1]} : vector<4x512xf32> to vector<4x128xf32>
    %5 = arith.maximumf %3, %4 : vector<4x128xf32>
    %6 = vector.extract_strided_slice %2 {offsets = [0, 256], sizes = [4, 128], strides = [1, 1]} : vector<4x512xf32> to vector<4x128xf32>
    %7 = arith.maximumf %5, %6 : vector<4x128xf32>
    %8 = vector.extract_strided_slice %2 {offsets = [0, 384], sizes = [4, 128], strides = [1, 1]} : vector<4x512xf32> to vector<4x128xf32>
    %9 = arith.maximumf %7, %8 : vector<4x128xf32>
    %c0_3 = arith.constant 0 : index
    %c0_4 = arith.constant 0 : index
    %10 = vector.load %arg2[%c0_3, %c0_4] : memref<4x1xf32, #tpu.memory_space<vmem>>, vector<4x1xf32>
    %11 = vector.broadcast %10 : vector<4x1xf32> to vector<4x128xf32>
    %12 = arith.addf %9, %11 : vector<4x128xf32>
    %cst_5 = arith.constant 0.000000e+00 : f32
    %13 = vector.broadcast %cst_5 : f32 to vector<4x128xf32>
    %14 = arith.maximumf %12, %13 : vector<4x128xf32>
    %15 = tpu.iota {dimensions = array<i32: 1>} : vector<1x128xi32>
    %c98_i32 = arith.constant 98 : i32
    %16 = vector.broadcast %c98_i32 : i32 to vector<1x128xi32>
    %17 = arith.cmpi slt, %15, %16 : vector<1x128xi32>
    %18 = arith.extui %17 : vector<1x128xi1> to vector<1x128xi32>
    %19 = arith.sitofp %18 : vector<1x128xi32> to vector<1x128xf32>
    %20 = vector.broadcast %19 : vector<1x128xf32> to vector<4x128xf32>
    %21 = arith.mulf %14, %20 : vector<4x128xf32>
    %cst_6 = arith.constant dense<0.000000e+00> : vector<4xf32>
    %22 = vector.multi_reduction <add>, %21, %cst_6 [1] : vector<4x128xf32> to vector<4xf32>
    %23 = vector.shape_cast %22 : vector<4xf32> to vector<4x1xf32>
    %cst_7 = arith.constant 0.0102040814 : f32
    %24 = vector.broadcast %cst_7 : f32 to vector<4x1xf32>
    %25 = arith.mulf %23, %24 : vector<4x1xf32>
    %26 = vector.broadcast %25 : vector<4x1xf32> to vector<4x128xf32>
    %27 = arith.subf %14, %26 : vector<4x128xf32>
    %28 = vector.broadcast %19 : vector<1x128xf32> to vector<4x128xf32>
    %29 = arith.mulf %27, %28 : vector<4x128xf32>
    %30 = arith.mulf %29, %29 : vector<4x128xf32>
    %cst_8 = arith.constant dense<0.000000e+00> : vector<4xf32>
    %31 = vector.multi_reduction <add>, %30, %cst_8 [1] : vector<4x128xf32> to vector<4xf32>
    %32 = vector.shape_cast %31 : vector<4xf32> to vector<4x1xf32>
    %cst_9 = arith.constant 0.0102040814 : f32
    %33 = vector.broadcast %cst_9 : f32 to vector<4x1xf32>
    %34 = arith.mulf %32, %33 : vector<4x1xf32>
    %c0_10 = arith.constant 0 : index
    %c0_11 = arith.constant 0 : index
    %35 = vector.load %arg3[%c0_10, %c0_11] : memref<4x1xf32, #tpu.memory_space<vmem>>, vector<4x1xf32>
    %36 = vector.broadcast %35 : vector<4x1xf32> to vector<4x128xf32>
    %37 = arith.mulf %36, %29 : vector<4x128xf32>
    %cst_12 = arith.constant 9.99999974E-6 : f32
    %38 = vector.broadcast %cst_12 : f32 to vector<4x1xf32>
    %39 = arith.addf %34, %38 : vector<4x1xf32>
    %40 = math.rsqrt %39 : vector<4x1xf32>
    %41 = vector.broadcast %40 : vector<4x1xf32> to vector<4x128xf32>
    %42 = arith.mulf %37, %41 : vector<4x128xf32>
    %c0_13 = arith.constant 0 : index
    %c0_14 = arith.constant 0 : index
    %43 = vector.load %arg4[%c0_13, %c0_14] : memref<4x1xf32, #tpu.memory_space<vmem>>, vector<4x1xf32>
    %44 = vector.broadcast %43 : vector<4x1xf32> to vector<4x128xf32>
    %45 = arith.addf %42, %44 : vector<4x128xf32>
    %46 = vector.broadcast %19 : vector<1x128xf32> to vector<4x128xf32>
    %47 = arith.mulf %45, %46 : vector<4x128xf32>
    %c0_15 = arith.constant 0 : index
    %c0_16 = arith.constant 0 : index
    %48 = vector.load %arg5[%c0_15, %c0_16] : memref<128x2048xbf16, #tpu.memory_space<vmem>>, vector<128x2048xbf16>
    %49 = arith.extf %48 : vector<128x2048xbf16> to vector<128x2048xf32>
    %cst_17 = arith.constant dense<0.000000e+00> : vector<4x2048xf32>
    %50 = tpu.matmul %47, %49, %cst_17 {dimension_numbers = #tpu.dot_dimension_numbers<[1], [0], [0], [1], [0, 0, 1, 1], [], []>} : vector<4x128xf32>, vector<128x2048xf32>, vector<4x2048xf32> -> vector<4x2048xf32>
    %51 = vector.extract_strided_slice %50 {offsets = [0, 0], sizes = [4, 128], strides = [1, 1]} : vector<4x2048xf32> to vector<4x128xf32>
    %52 = vector.extract_strided_slice %50 {offsets = [0, 128], sizes = [4, 128], strides = [1, 1]} : vector<4x2048xf32> to vector<4x128xf32>
    %53 = vector.extract_strided_slice %50 {offsets = [0, 256], sizes = [4, 128], strides = [1, 1]} : vector<4x2048xf32> to vector<4x128xf32>
    %54 = vector.extract_strided_slice %50 {offsets = [0, 384], sizes = [4, 128], strides = [1, 1]} : vector<4x2048xf32> to vector<4x128xf32>
    %55 = vector.extract_strided_slice %50 {offsets = [0, 512], sizes = [4, 128], strides = [1, 1]} : vector<4x2048xf32> to vector<4x128xf32>
    %56 = vector.extract_strided_slice %50 {offsets = [0, 640], sizes = [4, 128], strides = [1, 1]} : vector<4x2048xf32> to vector<4x128xf32>
    %57 = vector.extract_strided_slice %50 {offsets = [0, 768], sizes = [4, 128], strides = [1, 1]} : vector<4x2048xf32> to vector<4x128xf32>
    %58 = vector.extract_strided_slice %50 {offsets = [0, 896], sizes = [4, 128], strides = [1, 1]} : vector<4x2048xf32> to vector<4x128xf32>
    %59 = vector.extract_strided_slice %50 {offsets = [0, 1024], sizes = [4, 128], strides = [1, 1]} : vector<4x2048xf32> to vector<4x128xf32>
    %60 = vector.extract_strided_slice %50 {offsets = [0, 1152], sizes = [4, 128], strides = [1, 1]} : vector<4x2048xf32> to vector<4x128xf32>
    %61 = vector.extract_strided_slice %50 {offsets = [0, 1280], sizes = [4, 128], strides = [1, 1]} : vector<4x2048xf32> to vector<4x128xf32>
    %62 = vector.extract_strided_slice %50 {offsets = [0, 1408], sizes = [4, 128], strides = [1, 1]} : vector<4x2048xf32> to vector<4x128xf32>
    %63 = vector.extract_strided_slice %50 {offsets = [0, 1536], sizes = [4, 128], strides = [1, 1]} : vector<4x2048xf32> to vector<4x128xf32>
    %64 = vector.extract_strided_slice %50 {offsets = [0, 1664], sizes = [4, 128], strides = [1, 1]} : vector<4x2048xf32> to vector<4x128xf32>
    %65 = vector.extract_strided_slice %50 {offsets = [0, 1792], sizes = [4, 128], strides = [1, 1]} : vector<4x2048xf32> to vector<4x128xf32>
    %66 = vector.extract_strided_slice %50 {offsets = [0, 1920], sizes = [4, 128], strides = [1, 1]} : vector<4x2048xf32> to vector<4x128xf32>
    %67 = tpu.concatenate %51, %52, %53, %54, %55, %56, %57, %58, %59, %60, %61, %62, %63, %64, %65, %66 in 0 : vector<4x128xf32>, vector<4x128xf32>, vector<4x128xf32>, vector<4x128xf32>, vector<4x128xf32>, vector<4x128xf32>, vector<4x128xf32>, vector<4x128xf32>, vector<4x128xf32>, vector<4x128xf32>, vector<4x128xf32>, vector<4x128xf32>, vector<4x128xf32>, vector<4x128xf32>, vector<4x128xf32>, vector<4x128xf32> -> vector<64x128xf32>
    %c0_18 = arith.constant 0 : index
    %c0_19 = arith.constant 0 : index
    %68 = vector.load %arg6[%c0_18, %c0_19] : memref<8x64xf32, #tpu.memory_space<vmem>>, vector<8x64xf32>
    %cst_20 = arith.constant dense<0.000000e+00> : vector<8x128xf32>
    %69 = tpu.matmul %68, %67, %cst_20 {dimension_numbers = #tpu.dot_dimension_numbers<[1], [0], [0], [1], [0, 0, 1, 1], [], []>} : vector<8x64xf32>, vector<64x128xf32>, vector<8x128xf32> -> vector<8x128xf32>
    %70 = vector.extract_strided_slice %69 {offsets = [0, 0], sizes = [8, 32], strides = [1, 1]} : vector<8x128xf32> to vector<8x32xf32>
    %71 = vector.extract_strided_slice %69 {offsets = [0, 32], sizes = [8, 32], strides = [1, 1]} : vector<8x128xf32> to vector<8x32xf32>
    %72 = arith.maximumf %70, %71 : vector<8x32xf32>
    %73 = vector.extract_strided_slice %69 {offsets = [0, 64], sizes = [8, 32], strides = [1, 1]} : vector<8x128xf32> to vector<8x32xf32>
    %74 = arith.maximumf %72, %73 : vector<8x32xf32>
    %75 = vector.extract_strided_slice %69 {offsets = [0, 96], sizes = [8, 32], strides = [1, 1]} : vector<8x128xf32> to vector<8x32xf32>
    %76 = arith.maximumf %74, %75 : vector<8x32xf32>
    %c0_21 = arith.constant 0 : index
    %c0_22 = arith.constant 0 : index
    %77 = vector.load %arg7[%c0_21, %c0_22] : memref<8x1xf32, #tpu.memory_space<vmem>>, vector<8x1xf32>
    %78 = vector.broadcast %77 : vector<8x1xf32> to vector<8x32xf32>
    %79 = arith.addf %76, %78 : vector<8x32xf32>
    %cst_23 = arith.constant 0.000000e+00 : f32
    %80 = vector.broadcast %cst_23 : f32 to vector<8x32xf32>
    %81 = arith.maximumf %79, %80 : vector<8x32xf32>
    %c0_24 = arith.constant 0 : index
    %c0_25 = arith.constant 0 : index
    %82 = vector.load %arg8[%c0_24, %c0_25] : memref<32x256xf32, #tpu.memory_space<vmem>>, vector<32x256xf32>
    %cst_26 = arith.constant dense<0.000000e+00> : vector<8x256xf32>
    %83 = tpu.matmul %81, %82, %cst_26 {dimension_numbers = #tpu.dot_dimension_numbers<[1], [0], [0], [1], [0, 0, 1, 1], [], []>} : vector<8x32xf32>, vector<32x256xf32>, vector<8x256xf32> -> vector<8x256xf32>
    %c0_27 = arith.constant 0 : index
    %c0_28 = arith.constant 0 : index
    %84 = vector.load %arg9[%c0_27, %c0_28] : memref<8x256xf32, #tpu.memory_space<vmem>>, vector<8x256xf32>
    %85 = arith.mulf %83, %84 : vector<8x256xf32>
    %cst_29 = arith.constant dense<0.000000e+00> : vector<256xf32>
    %86 = vector.multi_reduction <add>, %85, %cst_29 [0] : vector<8x256xf32> to vector<256xf32>
    %87 = vector.shape_cast %86 : vector<256xf32> to vector<1x256xf32>
    %88 = vector.extract_strided_slice %87 {offsets = [0, 0], sizes = [1, 128], strides = [1, 1]} : vector<1x256xf32> to vector<1x128xf32>
    %89 = vector.extract_strided_slice %87 {offsets = [0, 128], sizes = [1, 128], strides = [1, 1]} : vector<1x256xf32> to vector<1x128xf32>
    %90 = tpu.concatenate %88, %89 in 0 : vector<1x128xf32>, vector<1x128xf32> -> vector<2x128xf32>
    %c0_30 = arith.constant 0 : index
    %c0_31 = arith.constant 0 : index
    %91 = vector.load %arg10[%c0_30, %c0_31] : memref<128x32xf32, #tpu.memory_space<vmem>>, vector<128x32xf32>
    %cst_32 = arith.constant dense<0.000000e+00> : vector<2x32xf32>
    %92 = tpu.matmul %90, %91, %cst_32 {dimension_numbers = #tpu.dot_dimension_numbers<[1], [0], [0], [1], [0, 0, 1, 1], [], []>} : vector<2x128xf32>, vector<128x32xf32>, vector<2x32xf32> -> vector<2x32xf32>
    %c0_33 = arith.constant 0 : index
    %c0_34 = arith.constant 0 : index
    %93 = vector.load %arg11[%c0_33, %c0_34] : memref<1x32xf32, #tpu.memory_space<vmem>>, vector<1x32xf32>
    %94 = vector.broadcast %93 : vector<1x32xf32> to vector<2x32xf32>
    %95 = arith.addf %92, %94 : vector<2x32xf32>
    %cst_35 = arith.constant 0.000000e+00 : f32
    %96 = vector.broadcast %cst_35 : f32 to vector<2x32xf32>
    %97 = arith.maximumf %95, %96 : vector<2x32xf32>
    %c0_36 = arith.constant 0 : index
    %c0_37 = arith.constant 0 : index
    %98 = vector.load %arg12[%c0_36, %c0_37] : memref<32x10xf32, #tpu.memory_space<vmem>>, vector<32x10xf32>
    %cst_38 = arith.constant dense<0.000000e+00> : vector<2x10xf32>
    %99 = tpu.matmul %97, %98, %cst_38 {dimension_numbers = #tpu.dot_dimension_numbers<[1], [0], [0], [1], [0, 0, 1, 1], [], []>} : vector<2x32xf32>, vector<32x10xf32>, vector<2x10xf32> -> vector<2x10xf32>
    %c0_39 = arith.constant 0 : index
    %c0_40 = arith.constant 0 : index
    %100 = vector.load %arg13[%c0_39, %c0_40] : memref<1x10xf32, #tpu.memory_space<vmem>>, vector<1x10xf32>
    %101 = vector.broadcast %100 : vector<1x10xf32> to vector<2x10xf32>
    %102 = arith.addf %99, %101 : vector<2x10xf32>
    %c0_41 = arith.constant 0 : index
    %c0_42 = arith.constant 0 : index
    %103 = vector.load %arg14[%c0_41, %c0_42] : memref<2x10xf32, #tpu.memory_space<vmem>>, vector<2x10xf32>
    tpu.vector_store %arg14[%c0_41, %c0_42], %102 {strides = array<i32>} : memref<2x10xf32, #tpu.memory_space<vmem>>, vector<2x10xf32>,
    return
  }
}

</mosaic_0001>

<bundles_post_ra>
// kernel: forward.1
= control target key start
LH: loop header
LB: loop body
LE: loop exit
PB: predicated region body
PF: predicated region fallthrough
CT: control target
= control target key end

     0   :  { %vm57_vm0 = vcmask 130048   ;;  %v1187_v6 = vmov 0   ;;  %s1838_s0 = inlined_call_operand.vmem [shape: f32[16,512], index: 0, kind: input, shape index: {}]   ;;  %s1839_s1 = inlined_call_operand.vmem [shape: f32[4,16], index: 1, kind: input, shape index: {}]   ;;  %s1840_s2 = inlined_call_operand.vmem [shape: f32[4,1], index: 2, kind: input, shape index: {}]   ;;  %s1841_s3 = inlined_call_operand.vmem [shape: f32[4,1], index: 3, kind: input, shape index: {}]   ;;  %s1842_s4 = inlined_call_operand.vmem [shape: f32[4,1], index: 4, kind: input, shape index: {}]   ;;  %s1843_s5 = inlined_call_operand.vmem [shape: bf16[128,2048], index: 5, kind: input, shape index: {}]   ;;  %s1844_s6 = inlined_call_operand.vmem [shape: f32[8,64], index: 6, kind: input, shape index: {}]   ;;  %s1845_s7 = inlined_call_operand.vmem [shape: f32[8,1], index: 7, kind: input, shape index: {}]   ;;  %s1846_s8 = inlined_call_operand.vmem [shape: f32[32,256], index: 8, kind: input, shape index: {}]   ;;  %s1847_s9 = inlined_call_operand.vmem [shape: f32[8,256], index: 9, kind: input, shape index: {}]   ;;  %s1848_s10 = inlined_call_operand.vmem [shape: f32[128,32], index: 10, kind: input, shape index: {}]   ;;  %s1849_s11 = inlined_call_operand.vmem [shape: f32[1,32], index: 11, kind: input, shape index: {}]   ;;  %s1850_s12 = inlined_call_operand.vmem [shape: f32[32,10], index: 12, kind: input, shape index: {}]   ;;  %s1851_s13 = inlined_call_operand.vmem [shape: f32[1,10], index: 13, kind: input, shape index: {}]   ;;  %s1852_s14 = inlined_call_operand.hbm [shape: f32[2,10], index: 14, kind: output, shape index: {}]  }
   0x1   :  { %v55_v0 = vld [vmem:[%s1838_s0 + $0x30] sm:$0xff]  ;;  %v48_v2 = vld [vmem:[%s1839_s1] sm:$0xf]  ;;  %v54_v4 = vld [vmem:[%s1838_s0 + $0x28] sm:$0xff]  ;;  %1154 = vset.pattern.permute.xlu0 %v1187_v6  ;;  %1155 = vset.pattern.permute.xlu1 %v1187_v6 }
   0x2   :  { %v51_v1 = vld [vmem:[%s1838_s0 + $0x10] sm:$0xff]  ;;  %115 = vmatpush.msra.mxu2 %v55_v0  ;;  %v53_v3 = vld [vmem:[%s1838_s0 + $0x20] sm:$0xff]  ;;  %95 = vmatpush.msra.mxu1 %v54_v4  ;;  %v50_v7 = vld [vmem:[%s1838_s0 + $0x8] sm:$0xff] }
   0x3   :  { %v49_v5 = vld [vmem:[%s1838_s0] sm:$0xff]  ;;  %75 = vmatpush.msra.mxu0 %v53_v3  ;;  %v56_v8 = vld [vmem:[%s1838_s0 + $0x38] sm:$0xff] }
   0x4   :  { %116 = vmatpush.msra.mxu2 %v51_v1  ;;  %v144_v9 = vld [vmem:[%s1840_s2] sm:$0xf] }
   0x5   :  { %1141 = vmatmul.msk.f32.vlgmr.msra.gmra.mxu2 %vm57_vm0, %v48_v2  ;;  %76 = vmatpush.msra.mxu0 %v49_v5 }
   0x6   :  { %19 = vsyncpa [#allocation3], 0  ;;  %96 = vmatpush.msra.mxu1 %v50_v7  ;;  %1139 = vmatmul.msk.f32.vlgmr.msra.gmra.mxu0 %vm57_vm0, %v48_v2  ;;  %v52_v10 = vld [vmem:[%s1838_s0 + $0x18] sm:$0xff]  ;;  %v152_v14 = vlaneseq  ;;  %v1188_v22 = vmov 0.0   ;;  %vm158_vm2 = vcmask 1043456   ;;  %v317_v31 = vld [vmem:[%s1843_s5 + $0x3c0] sm:$0xff] }
   0x7   :  { %1140 = vmatmul.msk.f32.vlgmr.msra.gmra.mxu1 %vm57_vm0, %v48_v2  ;;  %135 = vmatpush.msrb.mxu2 %v56_v8  ;;  %v189_v30 = vld [vmem:[%s1842_s4] sm:$0xf]  ;;  %v318_v32 = vld [vmem:[%s1843_s5 + $0x3c8] sm:$0xff]  ;;  %v565_v33 = vunpack.c.l.bf16 %v317_v31  ;;  %v566_v34 = vunpack.c.h.bf16 %v317_v31  ;;  %vm934_vm6 = vcmask 523264   ;;  %s1189_s24 = smov 96   ;;  %s1190_s25 = smov 64  }
   0x8   :  { %147 = vperm.xlu0 %1154, %v144_v9   ;;  %1156 = vset.pattern.permute.xlu2 %v1187_v6  ;;  %v153_v16 = vand.u32 127, %v152_v14  ;;  %v567_v35 = vunpack.c.l.bf16 %v318_v32  ;;  %v568_v36 = vunpack.c.h.bf16 %v318_v32  ;;  %v309_v37 = vld [vmem:[%s1843_s5 + $0x380] sm:$0xff]  ;;  %v310_v38 = vld [vmem:[%s1843_s5 + $0x388] sm:$0xff]  ;;  %s1191_s1 = smov 32   ;;  %vm987_vm7 = vcmask 261120   ;;  %s1192_s20 = smov [#allocation2]  }
   0x9   :  { %136 = vmatpush.msrb.mxu2 %v52_v10  ;;  %192 = vperm.xlu2 %1156, %v189_v30   ;;  %v301_v39 = vld [vmem:[%s1843_s5 + $0x340] sm:$0xff]  ;;  %v549_v41 = vunpack.c.l.bf16 %v309_v37  ;;  %v550_v42 = vunpack.c.h.bf16 %v309_v37  ;;  %v551_v43 = vunpack.c.l.bf16 %v310_v38  ;;  %v302_v44 = vld [vmem:[%s1843_s5 + $0x348] sm:$0xff]  ;;  %v552_v46 = vunpack.c.h.bf16 %v310_v38  ;;  %s1128_s21 = sshll.u32 %s1192_s20, 4  ;;  %s1129_s21 = int_to_ptr.vmem [resolvable:$true] %s1128_s21 }
   0xa   :  { %vm154_vm1 = vcmp.lt.s32.totalorder %v153_v16, 98  ;;  %v293_v45 = vld [vmem:[%s1843_s5 + $0x300] sm:$0xff]  ;;  %581 = vmatpush.msrb.mxu0 %v565_v33  ;;  %601 = vmatpush.msrb.mxu1 %v566_v34  ;;  %v533_v47 = vunpack.c.l.bf16 %v301_v39  ;;  %v294_v48 = vld [vmem:[%s1843_s5 + $0x308] sm:$0xff]  ;;  %v534_v50 = vunpack.c.h.bf16 %v301_v39  ;;  %v535_v51 = vunpack.c.l.bf16 %v302_v44 }
   0xb   :  { %v1302_v23 = vsel %vm154_vm1, 1.0, %v1188_v22  ;;  %621 = vmatpush.msra.mxu2 %v567_v35  ;;  %641 = vmatpush.msra.mxu3 %v568_v36  ;;  %v285_v52 = vld [vmem:[%s1843_s5 + $0x2c0] sm:$0xff]  ;;  %v536_v53 = vunpack.c.h.bf16 %v302_v44  ;;  %v517_v54 = vunpack.c.l.bf16 %v293_v45  ;;  %v286_v55 = vld [vmem:[%s1843_s5 + $0x2c8] sm:$0xff]  ;;  %v518_v57 = vunpack.c.h.bf16 %v293_v45 }
   0xc   :  { %582 = vmatpush.msrb.mxu0 %v549_v41  ;;  %602 = vmatpush.msrb.mxu1 %v550_v42  ;;  %v519_v58 = vunpack.c.l.bf16 %v294_v48  ;;  %v277_v59 = vld [vmem:[%s1843_s5 + $0x280] sm:$0xff]  ;;  %v520_v60 = vunpack.c.h.bf16 %v294_v48  ;;  %v501_v61 = vunpack.c.l.bf16 %v285_v52  ;;  %v278_v62 = vld [vmem:[%s1843_s5 + $0x288] sm:$0xff]  ;;  %v502_v63 = vunpack.c.h.bf16 %v285_v52 }
   0xd   :  { %1142 = vmatmul.msk.f32.vlgmr.msrb.gmra.mxu2 %vm57_vm0, %v48_v2  ;;  %642 = vmatpush.msra.mxu3 %v552_v46  ;;  %v503_v0 = vunpack.c.l.bf16 %v286_v55  ;;  %v269_v1 = vld [vmem:[%s1843_s5 + $0x240] sm:$0xff]  ;;  %v504_v2 = vunpack.c.h.bf16 %v286_v55  ;;  %v485_v3 = vunpack.c.l.bf16 %v277_v59  ;;  %v270_v4 = vld [vmem:[%s1843_s5 + $0x248] sm:$0xff]  ;;  %v486_v5 = vunpack.c.h.bf16 %v277_v59 }
   0xe   :  { %622 = vmatpush.msra.mxu2 %v551_v43  ;;  %583 = vmatpush.msrb.mxu0 %v533_v47  ;;  %v487_v6 = vunpack.c.l.bf16 %v278_v62  ;;  %v261_v7 = vld [vmem:[%s1843_s5 + $0x200] sm:$0xff]  ;;  %v488_v8 = vunpack.c.h.bf16 %v278_v62  ;;  %v469_v9 = vunpack.c.l.bf16 %v269_v1  ;;  %v262_v10 = vld [vmem:[%s1843_s5 + $0x208] sm:$0xff]  ;;  %v472_v14 = vunpack.c.h.bf16 %v270_v4 }
   0xf   :  { %603 = vmatpush.msrb.mxu1 %v534_v50  ;;  %643 = vmatpush.msra.mxu3 %v536_v53  ;;  %v254_v16 = vld [vmem:[%s1843_s5 + $0x1c8] sm:$0xff]  ;;  %v229_v32 = vld [vmem:[%s1843_s5 + $0x100] sm:$0xff]  ;;  %vm1047_vm8 = vcmask 1040384   ;;  %vm1121_vm9 = vcmask 74752  }
  0x10   :  { %623 = vmatpush.msra.mxu2 %v535_v51  ;;  %584 = vmatpush.msrb.mxu0 %v517_v54  ;;  %v246_v22 = vld [vmem:[%s1843_s5 + $0x188] sm:$0xff]  ;;  %v221_v38 = vld [vmem:[%s1843_s5 + $0xc0] sm:$0xff]  ;;  %v389_v41 = vunpack.c.l.bf16 %v229_v32  ;;  %v390_v43 = vunpack.c.h.bf16 %v229_v32 }
  0x11   :  { %604 = vmatpush.msrb.mxu1 %v518_v57  ;;  %644 = vmatpush.msra.mxu3 %v520_v60  ;;  %v423_v31 = vunpack.c.l.bf16 %v246_v22  ;;  %v424_v33 = vunpack.c.h.bf16 %v246_v22  ;;  %v230_v35 = vld [vmem:[%s1843_s5 + $0x108] sm:$0xff]  ;;  %v213_v45 = vld [vmem:[%s1843_s5 + $0x80] sm:$0xff]  ;;  %v373_v47 = vunpack.c.l.bf16 %v221_v38 }
  0x12   :  { %624 = vmatpush.msra.mxu2 %v519_v58  ;;  %585 = vmatpush.msrb.mxu0 %v501_v61  ;;  %v222_v42 = vld [vmem:[%s1843_s5 + $0xc8] sm:$0xff]  ;;  %v391_v44 = vunpack.c.l.bf16 %v230_v35  ;;  %v392_v46 = vunpack.c.h.bf16 %v230_v35  ;;  %v205_v51 = vld [vmem:[%s1843_s5 + $0x40] sm:$0xff]  ;;  %v357_v53 = vunpack.c.l.bf16 %v213_v45  ;;  %v358_v54 = vunpack.c.h.bf16 %v213_v45 }
  0x13   :  { %605 = vmatpush.msrb.mxu1 %v502_v63  ;;  %645 = vmatpush.msra.mxu3 %v504_v2  ;;  %v214_v48 = vld [vmem:[%s1843_s5 + $0x88] sm:$0xff]  ;;  %v375_v50 = vunpack.c.l.bf16 %v222_v42  ;;  %v376_v52 = vunpack.c.h.bf16 %v222_v42  ;;  %v341_v58 = vunpack.c.l.bf16 %v205_v51  ;;  %v342_v59 = vunpack.c.h.bf16 %v205_v51  ;;  %v170_v60 = vld [vmem:[%s1841_s3] sm:$0xf] }
  0x14   :  { %625 = vmatpush.msra.mxu2 %v503_v0  ;;  %586 = vmatpush.msrb.mxu0 %v485_v3  ;;  %v359_v55 = vunpack.c.l.bf16 %v214_v48  ;;  %v360_v57 = vunpack.c.h.bf16 %v214_v48  ;;  %v197_v63 = vld [vmem:[%s1843_s5] sm:$0xff]  ;;  %v198_v0 = vld [vmem:[%s1843_s5 + $0x8] sm:$0xff] }
  0x15   :  { %606 = vmatpush.msrb.mxu1 %v486_v5  ;;  %646 = vmatpush.msra.mxu3 %v488_v8  ;;  %v326_v2 = vunpack.c.h.bf16 %v197_v63  ;;  %v327_v3 = vunpack.c.l.bf16 %v198_v0  ;;  %v319_v5 = vld [vmem:[%s1843_s5 + $0x3d0] sm:$0xff] }
  0x16   :  { %626 = vmatpush.msra.mxu2 %v487_v6  ;;  %587 = vmatpush.msrb.mxu0 %v469_v9  ;;  %v320_v6 = vld [vmem:[%s1843_s5 + $0x3d8] sm:$0xff]  ;;  %v570_v8 = vunpack.c.h.bf16 %v319_v5 }
  0x17   :  { %647 = vmatpush.msra.mxu3 %v472_v14  ;;  %v571_v9 = vunpack.c.l.bf16 %v320_v6 }
  0x7a   :  { %v148_v19 = vpop.permute.xlu0 %147 }
  0x83   :  { %v78_v11 = vpop.f32.mrf.mxu0 }
  0x84   :  { %v98_v12 = vpop.f32.mrf.mxu1 }
  0x85   :  { %v141_v15 = vmax.f32 %v78_v11, %v98_v12  ;;  %v470_v11 = vunpack.c.h.bf16 %v269_v1  ;;  %v471_v12 = vunpack.c.l.bf16 %v270_v4  ;;  %v325_v1 = vunpack.c.l.bf16 %v197_v63 }
  0x86   :  { %v328_v4 = vunpack.c.h.bf16 %v198_v0 }
  0x87   :  { %607 = vmatpush.msrb.mxu1 %v470_v11  ;;  %627 = vmatpush.msra.mxu2 %v471_v12  ;;  %v311_v11 = vld [vmem:[%s1843_s5 + $0x390] sm:$0xff]  ;;  %v312_v12 = vld [vmem:[%s1843_s5 + $0x398] sm:$0xff] }
  0x88   :  { %v118_v13 = vpop.f32.mrf.mxu2  ;;  %v554_v14 = vunpack.c.h.bf16 %v311_v11 }
  0x89   :  { %v142_v17 = vmax.f32 %v141_v15, %v118_v13  ;;  %v253_v13 = vld [vmem:[%s1843_s5 + $0x1c0] sm:$0xff]  ;;  %v453_v15 = vunpack.c.l.bf16 %v261_v7 }
  0x8b   :  { %588 = vmatpush.msrb.mxu0 %v453_v15  ;;  %v555_v15 = vunpack.c.l.bf16 %v312_v12 }
  0x90   :  { %v138_v18 = vpop.f32.mrf.mxu2 }
  0x91   :  { %v143_v20 = vmax.f32 %v142_v17, %v138_v18  ;;  %v454_v17 = vunpack.c.h.bf16 %v261_v7  ;;  %v455_v18 = vunpack.c.l.bf16 %v262_v10  ;;  %v569_v7 = vunpack.c.l.bf16 %v319_v5  ;;  %v231_v5 = vld [vmem:[%s1843_s5 + $0x110] sm:$0xff] }
  0x93   :  { %v150_v21 = vadd.f32 %v148_v19, %v143_v20  ;;  %v245_v19 = vld [vmem:[%s1843_s5 + $0x180] sm:$0xff]  ;;  %v456_v20 = vunpack.c.h.bf16 %v262_v10  ;;  %608 = vmatpush.msrb.mxu1 %v454_v17  ;;  %628 = vmatpush.msra.mxu2 %v455_v18  ;;  %v572_v10 = vunpack.c.h.bf16 %v320_v6  ;;  %v303_v17 = vld [vmem:[%s1843_s5 + $0x350] sm:$0xff]  ;;  %v304_v18 = vld [vmem:[%s1843_s5 + $0x358] sm:$0xff] }
  0x94   :  { %v422_v30 = vunpack.c.h.bf16 %v245_v19  ;;  %v540_v22 = vunpack.c.h.bf16 %v304_v18 }
  0x95   :  { %v151_v24 = vmax.f32 %v150_v21, 0.0  ;;  %v437_v21 = vunpack.c.l.bf16 %v253_v13  ;;  %648 = vmatpush.msra.mxu3 %v456_v20  ;;  %v538_v20 = vunpack.c.h.bf16 %v303_v17 }
  0x97   :  { %v157_v25 = vmul.f32 %v1302_v23, %v151_v24  ;;  %589 = vmatpush.msrb.mxu0 %v437_v21  ;;  %v539_v21 = vunpack.c.l.bf16 %v304_v18 }
  0x99   :  { %v159_v26 = vsel %vm158_vm2, %v157_v25, 0.0  ;;  %v439_v25 = vunpack.c.l.bf16 %v254_v16 }
  0x9a   :  { %160 = vadd.xlane.f32.xlu0 %v159_v26  ;;  %v237_v26 = vld [vmem:[%s1843_s5 + $0x140] sm:$0xff] }
  0x9b   :  { %v405_v34 = vunpack.c.l.bf16 %v237_v26  ;;  %629 = vmatpush.msra.mxu2 %v439_v25  ;;  %v406_v36 = vunpack.c.h.bf16 %v237_v26  ;;  %v296_v25 = vld [vmem:[%s1843_s5 + $0x318] sm:$0xff] }
  0x9d   :  { %630 = vmatpush.msra.mxu2 %v423_v31  ;;  %v288_v31 = vld [vmem:[%s1843_s5 + $0x2d8] sm:$0xff] }
  0x9e   :  { %v508_v35 = vunpack.c.h.bf16 %v288_v31 }
 0x10d   :  { %v161_v27 = vpop.xlane.xlu0 %160 }
 0x10e   :  { %v162_v28 = vmul.f32 0.010204081, %v161_v27  ;;  %v440_v27 = vunpack.c.h.bf16 %v254_v16  ;;  %v556_v16 = vunpack.c.h.bf16 %v312_v12  ;;  %v394_v12 = vunpack.c.h.bf16 %v231_v5 }
 0x110   :  { %v163_v29 = vsub.f32 %v151_v24, %v162_v28  ;;  %v438_v24 = vunpack.c.h.bf16 %v253_v13  ;;  %v421_v28 = vunpack.c.l.bf16 %v245_v19  ;;  %649 = vmatpush.msra.mxu3 %v440_v27  ;;  %v553_v13 = vunpack.c.l.bf16 %v311_v11 }
 0x111   :  { %v537_v19 = vunpack.c.l.bf16 %v303_v17  ;;  %v393_v11 = vunpack.c.l.bf16 %v231_v5  ;;  %v297_v5 = vld [vmem:[%s1843_s5 + $0x320] sm:$0xff] }
 0x112   :  { %v1325_v40 = vmul.f32 %v1302_v23, %v163_v29  ;;  %v238_v29 = vld [vmem:[%s1843_s5 + $0x148] sm:$0xff]  ;;  %609 = vmatpush.msrb.mxu1 %v438_v24  ;;  %590 = vmatpush.msrb.mxu0 %v421_v28  ;;  %v295_v24 = vld [vmem:[%s1843_s5 + $0x310] sm:$0xff]  ;;  %v523_v28 = vunpack.c.l.bf16 %v296_v25 }
 0x113   :  { %v407_v37 = vunpack.c.l.bf16 %v238_v29  ;;  %v408_v39 = vunpack.c.h.bf16 %v238_v29  ;;  %650 = vmatpush.msra.mxu3 %v424_v33  ;;  %v521_v26 = vunpack.c.l.bf16 %v295_v24  ;;  %v522_v27 = vunpack.c.h.bf16 %v295_v24 }
 0x114   :  { %v165_v49 = vmul.f32 %v1325_v40, %v1325_v40  ;;  %610 = vmatpush.msrb.mxu1 %v422_v30  ;;  %591 = vmatpush.msrb.mxu0 %v405_v34  ;;  %v524_v29 = vunpack.c.h.bf16 %v296_v25  ;;  %v287_v30 = vld [vmem:[%s1843_s5 + $0x2d0] sm:$0xff]  ;;  %v507_v34 = vunpack.c.l.bf16 %v288_v31 }
 0x115   :  { %631 = vmatpush.msra.mxu2 %v407_v37  ;;  %651 = vmatpush.msra.mxu3 %v408_v39  ;;  %v505_v32 = vunpack.c.l.bf16 %v287_v30  ;;  %v506_v33 = vunpack.c.h.bf16 %v287_v30  ;;  %v280_v37 = vld [vmem:[%s1843_s5 + $0x298] sm:$0xff] }
 0x116   :  { %v166_v56 = vsel %vm158_vm2, %v165_v49, 0.0  ;;  %611 = vmatpush.msrb.mxu1 %v406_v36  ;;  %v374_v49 = vunpack.c.h.bf16 %v221_v38  ;;  %592 = vmatpush.msrb.mxu0 %v389_v41  ;;  %v279_v36 = vld [vmem:[%s1843_s5 + $0x290] sm:$0xff]  ;;  %v491_v41 = vunpack.c.l.bf16 %v280_v37  ;;  %v492_v42 = vunpack.c.h.bf16 %v280_v37 }
 0x117   :  { %167 = vadd.xlane.f32.xlu1 %v166_v56  ;;  %632 = vmatpush.msra.mxu2 %v391_v44  ;;  %v206_v56 = vld [vmem:[%s1843_s5 + $0x48] sm:$0xff]  ;;  %v489_v38 = vunpack.c.l.bf16 %v279_v36  ;;  %v490_v39 = vunpack.c.h.bf16 %v279_v36  ;;  %v272_v44 = vld [vmem:[%s1843_s5 + $0x258] sm:$0xff] }
 0x118   :  { %612 = vmatpush.msrb.mxu1 %v390_v43  ;;  %652 = vmatpush.msra.mxu3 %v392_v46  ;;  %v343_v61 = vunpack.c.l.bf16 %v206_v56  ;;  %v344_v62 = vunpack.c.h.bf16 %v206_v56  ;;  %v271_v43 = vld [vmem:[%s1843_s5 + $0x250] sm:$0xff]  ;;  %v476_v48 = vunpack.c.h.bf16 %v272_v44  ;;  %v256_v56 = vld [vmem:[%s1843_s5 + $0x1d8] sm:$0xff] }
 0x119   :  { %593 = vmatpush.msrb.mxu0 %v373_v47  ;;  %633 = vmatpush.msra.mxu2 %v375_v50  ;;  %v473_v45 = vunpack.c.l.bf16 %v271_v43  ;;  %v474_v46 = vunpack.c.h.bf16 %v271_v43  ;;  %v475_v47 = vunpack.c.l.bf16 %v272_v44  ;;  %v264_v50 = vld [vmem:[%s1843_s5 + $0x218] sm:$0xff] }
 0x11a   :  { %613 = vmatpush.msrb.mxu1 %v374_v49  ;;  %653 = vmatpush.msra.mxu3 %v376_v52  ;;  %v263_v49 = vld [vmem:[%s1843_s5 + $0x210] sm:$0xff] }
 0x11b   :  { %594 = vmatpush.msrb.mxu0 %v357_v53  ;;  %634 = vmatpush.msra.mxu2 %v359_v55  ;;  %v457_v51 = vunpack.c.l.bf16 %v263_v49  ;;  %v458_v52 = vunpack.c.h.bf16 %v263_v49  ;;  %v459_v53 = vunpack.c.l.bf16 %v264_v50  ;;  %v255_v55 = vld [vmem:[%s1843_s5 + $0x1d0] sm:$0xff] }
 0x11c   :  { %614 = vmatpush.msrb.mxu1 %v358_v54  ;;  %654 = vmatpush.msra.mxu3 %v360_v57  ;;  %v460_v54 = vunpack.c.h.bf16 %v264_v50  ;;  %v441_v57 = vunpack.c.l.bf16 %v255_v55 }
 0x11d   :  { %595 = vmatpush.msrb.mxu0 %v341_v58  ;;  %635 = vmatpush.msra.mxu2 %v343_v61  ;;  %v442_v58 = vunpack.c.h.bf16 %v255_v55  ;;  %v247_v61 = vld [vmem:[%s1843_s5 + $0x190] sm:$0xff]  ;;  %v321_v55 = vld [vmem:[%s1843_s5 + $0x3e0] sm:$0xff] }
 0x11e   :  { %615 = vmatpush.msrb.mxu1 %v342_v59  ;;  %655 = vmatpush.msra.mxu3 %v344_v62  ;;  %v443_v59 = vunpack.c.l.bf16 %v256_v56  ;;  %v248_v62 = vld [vmem:[%s1843_s5 + $0x198] sm:$0xff]  ;;  %v425_v63 = vunpack.c.l.bf16 %v247_v61  ;;  %v426_v0 = vunpack.c.h.bf16 %v247_v61  ;;  %v314_v61 = vld [vmem:[%s1843_s5 + $0x3a8] sm:$0xff] }
 0x11f   :  { %596 = vmatpush.msrb.mxu0 %v325_v1  ;;  %636 = vmatpush.msra.mxu2 %v327_v3  ;;  %v427_v1 = vunpack.c.l.bf16 %v248_v62  ;;  %v239_v3 = vld [vmem:[%s1843_s5 + $0x150] sm:$0xff] }
 0x120   :  { %616 = vmatpush.msrb.mxu1 %v326_v2  ;;  %656 = vmatpush.msra.mxu3 %v328_v4  ;;  %v428_v2 = vunpack.c.h.bf16 %v248_v62  ;;  %v240_v4 = vld [vmem:[%s1843_s5 + $0x158] sm:$0xff]  ;;  %v409_v6 = vunpack.c.l.bf16 %v239_v3 }
 0x121   :  { %661 = vmatpush.msra.mxu0 %v569_v7  ;;  %701 = vmatpush.msrb.mxu2 %v571_v9  ;;  %v410_v7 = vunpack.c.h.bf16 %v239_v3  ;;  %v411_v9 = vunpack.c.l.bf16 %v240_v4  ;;  %v559_v3 = vunpack.c.l.bf16 %v314_v61 }
 0x122   :  { %681 = vmatpush.msra.mxu1 %v570_v8  ;;  %721 = vmatpush.msrb.mxu3 %v572_v10  ;;  %v232_v8 = vld [vmem:[%s1843_s5 + $0x118] sm:$0xff]  ;;  %v412_v10 = vunpack.c.h.bf16 %v240_v4  ;;  %v560_v4 = vunpack.c.h.bf16 %v314_v61  ;;  %v225_v61 = vld [vmem:[%s1843_s5 + $0xe0] sm:$0xff] }
 0x123   :  { %662 = vmatpush.msra.mxu0 %v553_v13  ;;  %702 = vmatpush.msrb.mxu2 %v555_v15  ;;  %v395_v13 = vunpack.c.l.bf16 %v232_v8  ;;  %v223_v15 = vld [vmem:[%s1843_s5 + $0xd0] sm:$0xff] }
 0x124   :  { %682 = vmatpush.msra.mxu1 %v554_v14  ;;  %722 = vmatpush.msrb.mxu3 %v556_v16  ;;  %v396_v14 = vunpack.c.h.bf16 %v232_v8  ;;  %v224_v16 = vld [vmem:[%s1843_s5 + $0xd8] sm:$0xff]  ;;  %v377_v17 = vunpack.c.l.bf16 %v223_v15  ;;  %v378_v18 = vunpack.c.h.bf16 %v223_v15  ;;  %v298_v8 = vld [vmem:[%s1843_s5 + $0x328] sm:$0xff]  ;;  %v289_v15 = vld [vmem:[%s1843_s5 + $0x2e0] sm:$0xff] }
 0x125   :  { %663 = vmatpush.msra.mxu0 %v537_v19  ;;  %703 = vmatpush.msrb.mxu2 %v539_v21  ;;  %v379_v19 = vunpack.c.l.bf16 %v224_v16  ;;  %v216_v21 = vld [vmem:[%s1843_s5 + $0x98] sm:$0xff] }
 0x126   :  { %683 = vmatpush.msra.mxu1 %v538_v20  ;;  %723 = vmatpush.msrb.mxu3 %v540_v22  ;;  %v380_v20 = vunpack.c.h.bf16 %v224_v16  ;;  %v215_v22 = vld [vmem:[%s1843_s5 + $0x90] sm:$0xff]  ;;  %v363_v24 = vunpack.c.l.bf16 %v216_v21  ;;  %v364_v25 = vunpack.c.h.bf16 %v216_v21  ;;  %v290_v16 = vld [vmem:[%s1843_s5 + $0x2e8] sm:$0xff] }
 0x127   :  { %664 = vmatpush.msra.mxu0 %v521_v26  ;;  %704 = vmatpush.msrb.mxu2 %v523_v28  ;;  %v361_v26 = vunpack.c.l.bf16 %v215_v22  ;;  %v207_v28 = vld [vmem:[%s1843_s5 + $0x50] sm:$0xff]  ;;  %v511_v21 = vunpack.c.l.bf16 %v290_v16 }
 0x128   :  { %684 = vmatpush.msra.mxu1 %v522_v27  ;;  %724 = vmatpush.msrb.mxu3 %v524_v29  ;;  %v362_v27 = vunpack.c.h.bf16 %v215_v22  ;;  %v208_v29 = vld [vmem:[%s1843_s5 + $0x58] sm:$0xff]  ;;  %v345_v30 = vunpack.c.l.bf16 %v207_v28  ;;  %v346_v31 = vunpack.c.h.bf16 %v207_v28  ;;  %v512_v22 = vunpack.c.h.bf16 %v290_v16 }
 0x129   :  { %665 = vmatpush.msra.mxu0 %v505_v32  ;;  %705 = vmatpush.msrb.mxu2 %v507_v34  ;;  %v347_v32 = vunpack.c.l.bf16 %v208_v29  ;;  %v199_v34 = vld [vmem:[%s1843_s5 + $0x10] sm:$0xff] }
 0x12a   :  { %685 = vmatpush.msra.mxu1 %v506_v33  ;;  %725 = vmatpush.msrb.mxu3 %v508_v35  ;;  %v348_v33 = vunpack.c.h.bf16 %v208_v29  ;;  %v200_v35 = vld [vmem:[%s1843_s5 + $0x18] sm:$0xff]  ;;  %v329_v36 = vunpack.c.l.bf16 %v199_v34  ;;  %v330_v37 = vunpack.c.h.bf16 %v199_v34 }
 0x12b   :  { %666 = vmatpush.msra.mxu0 %v489_v38  ;;  %706 = vmatpush.msrb.mxu2 %v491_v41  ;;  %v331_v38 = vunpack.c.l.bf16 %v200_v35 }
 0x12c   :  { %686 = vmatpush.msra.mxu1 %v490_v39  ;;  %726 = vmatpush.msrb.mxu3 %v492_v42  ;;  %v332_v39 = vunpack.c.h.bf16 %v200_v35 }
 0x12d   :  { %667 = vmatpush.msra.mxu0 %v473_v45  ;;  %707 = vmatpush.msrb.mxu2 %v475_v47 }
 0x12e   :  { %687 = vmatpush.msra.mxu1 %v474_v46  ;;  %727 = vmatpush.msrb.mxu3 %v476_v48 }
 0x12f   :  { %668 = vmatpush.msra.mxu0 %v457_v51  ;;  %708 = vmatpush.msrb.mxu2 %v459_v53 }
 0x130   :  { %173 = vperm.xlu1 %1155, %v170_v60   ;;  %v444_v60 = vunpack.c.h.bf16 %v256_v56  ;;  %688 = vmatpush.msra.mxu1 %v458_v52  ;;  %v193_v52 = vpop.permute.xlu2 %192 }
 0x131   :  { %728 = vmatpush.msrb.mxu3 %v460_v54  ;;  %669 = vmatpush.msra.mxu0 %v441_v57  ;;  %v322_v57 = vld [vmem:[%s1843_s5 + $0x3e8] sm:$0xff] }
 0x132   :  { %689 = vmatpush.msra.mxu1 %v442_v58  ;;  %709 = vmatpush.msrb.mxu2 %v443_v59  ;;  %v313_v58 = vld [vmem:[%s1843_s5 + $0x3a0] sm:$0xff]  ;;  %v575_v62 = vunpack.c.l.bf16 %v322_v57 }
 0x133   :  { %729 = vmatpush.msrb.mxu3 %v444_v60  ;;  %670 = vmatpush.msra.mxu0 %v425_v63  ;;  %v574_v60 = vunpack.c.h.bf16 %v321_v55  ;;  %v576_v63 = vunpack.c.h.bf16 %v322_v57 }
 0x134   :  { %690 = vmatpush.msra.mxu1 %v426_v0  ;;  %710 = vmatpush.msrb.mxu2 %v427_v1  ;;  %v305_v0 = vld [vmem:[%s1843_s5 + $0x360] sm:$0xff]  ;;  %v557_v1 = vunpack.c.l.bf16 %v313_v58 }
 0x135   :  { %730 = vmatpush.msrb.mxu3 %v428_v2  ;;  %671 = vmatpush.msra.mxu0 %v409_v6  ;;  %v558_v2 = vunpack.c.h.bf16 %v313_v58  ;;  %v541_v6 = vunpack.c.l.bf16 %v305_v0  ;;  %v234_v58 = vld [vmem:[%s1843_s5 + $0x128] sm:$0xff] }
 0x136   :  { %691 = vmatpush.msra.mxu1 %v410_v7  ;;  %711 = vmatpush.msrb.mxu2 %v411_v9  ;;  %v542_v7 = vunpack.c.h.bf16 %v305_v0  ;;  %v226_v0 = vld [vmem:[%s1843_s5 + $0xe8] sm:$0xff] }
 0x137   :  { %731 = vmatpush.msrb.mxu3 %v412_v10  ;;  %672 = vmatpush.msra.mxu0 %v393_v11  ;;  %v525_v11 = vunpack.c.l.bf16 %v297_v5 }
 0x138   :  { %692 = vmatpush.msra.mxu1 %v394_v12  ;;  %712 = vmatpush.msrb.mxu2 %v395_v13  ;;  %v526_v12 = vunpack.c.h.bf16 %v297_v5  ;;  %v527_v13 = vunpack.c.l.bf16 %v298_v8  ;;  %v218_v5 = vld [vmem:[%s1843_s5 + $0xa8] sm:$0xff] }
 0x139   :  { %732 = vmatpush.msrb.mxu3 %v396_v14  ;;  %673 = vmatpush.msra.mxu0 %v377_v17  ;;  %v528_v14 = vunpack.c.h.bf16 %v298_v8  ;;  %v281_v17 = vld [vmem:[%s1843_s5 + $0x2a0] sm:$0xff] }
 0x13a   :  { %693 = vmatpush.msra.mxu1 %v378_v18  ;;  %713 = vmatpush.msrb.mxu2 %v379_v19  ;;  %v509_v18 = vunpack.c.l.bf16 %v289_v15  ;;  %v510_v19 = vunpack.c.h.bf16 %v289_v15  ;;  %v209_v8 = vld [vmem:[%s1843_s5 + $0x60] sm:$0xff] }
 0x13b   :  { %733 = vmatpush.msrb.mxu3 %v380_v20  ;;  %674 = vmatpush.msra.mxu0 %v361_v26  ;;  %v282_v20 = vld [vmem:[%s1843_s5 + $0x2a8] sm:$0xff]  ;;  %v494_v26 = vunpack.c.h.bf16 %v281_v17  ;;  %v349_v15 = vunpack.c.l.bf16 %v209_v8  ;;  %v350_v16 = vunpack.c.h.bf16 %v209_v8  ;;  %v260_v8 = vld [vmem:[%s1843_s5 + $0x1f8] sm:$0xff] }
 0x13c   :  { %694 = vmatpush.msra.mxu1 %v362_v27  ;;  %714 = vmatpush.msrb.mxu2 %v363_v24  ;;  %v273_v24 = vld [vmem:[%s1843_s5 + $0x260] sm:$0xff]  ;;  %v274_v27 = vld [vmem:[%s1843_s5 + $0x268] sm:$0xff]  ;;  %v495_v28 = vunpack.c.l.bf16 %v282_v20  ;;  %v496_v29 = vunpack.c.h.bf16 %v282_v20 }
 0x13d   :  { %734 = vmatpush.msrb.mxu3 %v364_v25  ;;  %675 = vmatpush.msra.mxu0 %v345_v30  ;;  %v493_v25 = vunpack.c.l.bf16 %v281_v17  ;;  %v265_v30 = vld [vmem:[%s1843_s5 + $0x220] sm:$0xff]  ;;  %v479_v34 = vunpack.c.l.bf16 %v274_v27  ;;  %v480_v35 = vunpack.c.h.bf16 %v274_v27  ;;  %v202_v17 = vld [vmem:[%s1843_s5 + $0x28] sm:$0xff]  ;;  %v315_v27 = vld [vmem:[%s1843_s5 + $0x3b0] sm:$0xff] }
 0x13e   :  { %695 = vmatpush.msra.mxu1 %v346_v31  ;;  %715 = vmatpush.msrb.mxu2 %v347_v32  ;;  %v477_v31 = vunpack.c.l.bf16 %v273_v24  ;;  %v478_v32 = vunpack.c.h.bf16 %v273_v24  ;;  %v336_v24 = vunpack.c.h.bf16 %v202_v17 }
 0x13f   :  { %735 = vmatpush.msrb.mxu3 %v348_v33  ;;  %676 = vmatpush.msra.mxu0 %v329_v36  ;;  %v266_v33 = vld [vmem:[%s1843_s5 + $0x228] sm:$0xff]  ;;  %v257_v36 = vld [vmem:[%s1843_s5 + $0x1e0] sm:$0xff] }
 0x140   :  { %696 = vmatpush.msra.mxu1 %v330_v37  ;;  %716 = vmatpush.msrb.mxu2 %v331_v38  ;;  %v461_v37 = vunpack.c.l.bf16 %v265_v30  ;;  %v462_v38 = vunpack.c.h.bf16 %v265_v30  ;;  %v316_v30 = vld [vmem:[%s1843_s5 + $0x3b8] sm:$0xff] }
 0x141   :  { %736 = vmatpush.msrb.mxu3 %v332_v39  ;;  %v258_v39 = vld [vmem:[%s1843_s5 + $0x1e8] sm:$0xff] }
 0x18a   :  { %v168_v41 = vpop.xlane.xlu1 %167 }
 0x18b   :  { %v169_v42 = vmul.f32 0.010204081, %v168_v41  ;;  %v463_v41 = vunpack.c.l.bf16 %v266_v33 }
 0x18d   :  { %v177_v43 = vadd.f32 1e-05, %v169_v42  ;;  %v464_v42 = vunpack.c.h.bf16 %v266_v33  ;;  %v307_v33 = vld [vmem:[%s1843_s5 + $0x370] sm:$0xff] }
 0x18f   :  { %1159 = vrsqrt.f32 %v177_v43  ;;  %vm184_vm4 = vweird.f32 %v177_v43 }
 0x195   :  { %v1160_v44 = vpop.eup %1159 }
 0x196   :  { %v179_v45 = vmul.f32 %v1160_v44, %v177_v43  ;;  %vm185_vm3 = vweird.f32 %v1160_v44  ;;  %v249_v43 = vld [vmem:[%s1843_s5 + $0x1a0] sm:$0xff] }
 0x197   :  { %vm186_vm5 = vmor %vm184_vm4, %vm185_vm3 }
 0x198   :  { %v180_v46 = vmul.f32 %v1160_v44, %v179_v45  ;;  %v446_v45 = vunpack.c.h.bf16 %v257_v36 }
 0x19a   :  { %v181_v47 = vmul.f32 0.5, %v180_v46  ;;  %v250_v46 = vld [vmem:[%s1843_s5 + $0x1a8] sm:$0xff] }
 0x19c   :  { %v182_v48 = vsub.f32 1.5, %v181_v47  ;;  %v447_v47 = vunpack.c.l.bf16 %v258_v39 }
 0x19e   :  { %v183_v49 = vmul.f32 %v1160_v44, %v182_v48  ;;  %v448_v48 = vunpack.c.h.bf16 %v258_v39  ;;  %v299_v39 = vld [vmem:[%s1843_s5 + $0x330] sm:$0xff] }
 0x1a0   :  { %v187_v53 = vsel %vm186_vm5, %v1160_v44, %v183_v49  ;;  %v445_v44 = vunpack.c.l.bf16 %v257_v36  ;;  %v241_v49 = vld [vmem:[%s1843_s5 + $0x160] sm:$0xff]  ;;  %v308_v36 = vld [vmem:[%s1843_s5 + $0x378] sm:$0xff] }
 0x1a1   :  { %v414_v57 = vunpack.c.h.bf16 %v241_v49 }
 0x1a2   :  { %v174_v50 = vpop.permute.xlu1 %173 }
 0x1a3   :  { %v176_v51 = vmul.f32 %v174_v50, %v1325_v40  ;;  %v573_v40 = vunpack.c.l.bf16 %v321_v55  ;;  %v429_v50 = vunpack.c.l.bf16 %v249_v43  ;;  %v233_v55 = vld [vmem:[%s1843_s5 + $0x120] sm:$0xff] }
 0x1a5   :  { %v188_v54 = vmul.f32 %v187_v53, %v176_v51  ;;  %v430_v51 = vunpack.c.h.bf16 %v249_v43  ;;  %v431_v53 = vunpack.c.l.bf16 %v250_v46  ;;  %v300_v43 = vld [vmem:[%s1843_s5 + $0x338] sm:$0xff] }
 0x1a7   :  { %v195_v56 = vadd.f32 %v193_v52, %v188_v54  ;;  %v242_v52 = vld [vmem:[%s1843_s5 + $0x168] sm:$0xff]  ;;  %v432_v54 = vunpack.c.h.bf16 %v250_v46  ;;  %v291_v46 = vld [vmem:[%s1843_s5 + $0x2f0] sm:$0xff] }
 0x1a9   :  { %v1521_v59 = vmul.f32 %v1302_v23, %v195_v56  ;;  %v306_v23 = vld [vmem:[%s1843_s5 + $0x368] sm:$0xff]  ;;  %v413_v56 = vunpack.c.l.bf16 %v241_v49  ;;  %v292_v49 = vld [vmem:[%s1843_s5 + $0x2f8] sm:$0xff] }
 0x1aa   :  { %v543_v9 = vunpack.c.l.bf16 %v306_v23  ;;  %v544_v10 = vunpack.c.h.bf16 %v306_v23  ;;  %v217_v23 = vld [vmem:[%s1843_s5 + $0xa0] sm:$0xff] }
 0x1ab   :  { %597 = vmatmul.f32.vlgmr.msrb.gmra.mxu0 %v1521_v59  ;;  %617 = vmatmul.f32.vlgmr.msrb.gmra.mxu1 %v1521_v59 }
 0x1ac   :  { %637 = vmatmul.f32.vlgmr.msra.gmra.mxu2 %v1521_v59  ;;  %657 = vmatmul.f32.vlgmr.msra.gmra.mxu3 %v1521_v59 }
 0x1ad   :  { %741 = vmatpush.msrb.mxu0 %v573_v40  ;;  %761 = vmatpush.msrb.mxu1 %v574_v60  ;;  %v415_v40 = vunpack.c.l.bf16 %v242_v52  ;;  %v416_v60 = vunpack.c.h.bf16 %v242_v52  ;;  %v283_v52 = vld [vmem:[%s1843_s5 + $0x2b0] sm:$0xff] }
 0x1ae   :  { %781 = vmatpush.msra.mxu2 %v575_v62  ;;  %801 = vmatpush.msra.mxu3 %v576_v63  ;;  %v397_v62 = vunpack.c.l.bf16 %v233_v55  ;;  %v398_v63 = vunpack.c.h.bf16 %v233_v55  ;;  %v284_v55 = vld [vmem:[%s1843_s5 + $0x2b8] sm:$0xff] }
 0x1af   :  { %742 = vmatpush.msrb.mxu0 %v557_v1  ;;  %762 = vmatpush.msrb.mxu1 %v558_v2  ;;  %v399_v1 = vunpack.c.l.bf16 %v234_v58  ;;  %v400_v2 = vunpack.c.h.bf16 %v234_v58  ;;  %v275_v58 = vld [vmem:[%s1843_s5 + $0x270] sm:$0xff] }
 0x1b0   :  { %782 = vmatpush.msra.mxu2 %v559_v3  ;;  %802 = vmatpush.msra.mxu3 %v560_v4  ;;  %v381_v3 = vunpack.c.l.bf16 %v225_v61  ;;  %v382_v4 = vunpack.c.h.bf16 %v225_v61  ;;  %v276_v61 = vld [vmem:[%s1843_s5 + $0x278] sm:$0xff] }
 0x1b1   :  { %743 = vmatpush.msrb.mxu0 %v541_v6  ;;  %763 = vmatpush.msrb.mxu1 %v542_v7  ;;  %v383_v6 = vunpack.c.l.bf16 %v226_v0  ;;  %v384_v7 = vunpack.c.h.bf16 %v226_v0  ;;  %v267_v0 = vld [vmem:[%s1843_s5 + $0x230] sm:$0xff] }
 0x1b2   :  { %783 = vmatpush.msra.mxu2 %v543_v9  ;;  %803 = vmatpush.msra.mxu3 %v544_v10  ;;  %v365_v9 = vunpack.c.l.bf16 %v217_v23  ;;  %v366_v10 = vunpack.c.h.bf16 %v217_v23  ;;  %v268_v23 = vld [vmem:[%s1843_s5 + $0x238] sm:$0xff] }
 0x1b3   :  { %744 = vmatpush.msrb.mxu0 %v525_v11  ;;  %764 = vmatpush.msrb.mxu1 %v526_v12  ;;  %v210_v11 = vld [vmem:[%s1843_s5 + $0x68] sm:$0xff]  ;;  %v367_v12 = vunpack.c.l.bf16 %v218_v5 }
 0x1b4   :  { %784 = vmatpush.msra.mxu2 %v527_v13  ;;  %804 = vmatpush.msra.mxu3 %v528_v14  ;;  %v368_v13 = vunpack.c.h.bf16 %v218_v5  ;;  %v201_v14 = vld [vmem:[%s1843_s5 + $0x20] sm:$0xff]  ;;  %v259_v5 = vld [vmem:[%s1843_s5 + $0x1f0] sm:$0xff] }
 0x1b5   :  { %677 = vmatmul.f32.vlgmr.msra.gmra.mxu0 %v1521_v59  ;;  %697 = vmatmul.f32.vlgmr.msra.gmra.mxu1 %v1521_v59  ;;  %v333_v20 = vunpack.c.l.bf16 %v201_v14 }
 0x1b6   :  { %717 = vmatmul.f32.vlgmr.msrb.gmra.mxu2 %v1521_v59  ;;  %737 = vmatmul.f32.vlgmr.msrb.gmra.mxu3 %v1521_v59 }
 0x1b7   :  { %745 = vmatpush.msrb.mxu0 %v509_v18  ;;  %765 = vmatpush.msrb.mxu1 %v510_v19  ;;  %v351_v18 = vunpack.c.l.bf16 %v210_v11  ;;  %v352_v19 = vunpack.c.h.bf16 %v210_v11  ;;  %v251_v11 = vld [vmem:[%s1843_s5 + $0x1b0] sm:$0xff] }
 0x1b8   :  { %785 = vmatpush.msra.mxu2 %v511_v21  ;;  %805 = vmatpush.msra.mxu3 %v512_v22  ;;  %v334_v21 = vunpack.c.h.bf16 %v201_v14  ;;  %v335_v22 = vunpack.c.l.bf16 %v202_v17  ;;  %v252_v14 = vld [vmem:[%s1843_s5 + $0x1b8] sm:$0xff]  ;;  %v243_v17 = vld [vmem:[%s1843_s5 + $0x170] sm:$0xff] }
 0x1b9   :  { %746 = vmatpush.msrb.mxu0 %v493_v25  ;;  %766 = vmatpush.msrb.mxu1 %v494_v26  ;;  %v323_v25 = vld [vmem:[%s1843_s5 + $0x3f0] sm:$0xff]  ;;  %v324_v26 = vld [vmem:[%s1843_s5 + $0x3f8] sm:$0xff] }
 0x1ba   :  { %786 = vmatpush.msra.mxu2 %v495_v28  ;;  %806 = vmatpush.msra.mxu3 %v496_v29  ;;  %v577_v28 = vunpack.c.l.bf16 %v323_v25  ;;  %v578_v29 = vunpack.c.h.bf16 %v323_v25  ;;  %v417_v25 = vunpack.c.l.bf16 %v243_v17 }
 0x1bb   :  { %747 = vmatpush.msrb.mxu0 %v477_v31  ;;  %767 = vmatpush.msrb.mxu1 %v478_v32  ;;  %v579_v31 = vunpack.c.l.bf16 %v324_v26  ;;  %v580_v32 = vunpack.c.h.bf16 %v324_v26  ;;  %v418_v26 = vunpack.c.h.bf16 %v243_v17 }
 0x1bc   :  { %787 = vmatpush.msra.mxu2 %v479_v34  ;;  %807 = vmatpush.msra.mxu3 %v480_v35  ;;  %v561_v34 = vunpack.c.l.bf16 %v315_v27  ;;  %v562_v35 = vunpack.c.h.bf16 %v315_v27  ;;  %v236_v27 = vld [vmem:[%s1843_s5 + $0x138] sm:$0xff] }
 0x1bd   :  { %748 = vmatpush.msrb.mxu0 %v461_v37  ;;  %768 = vmatpush.msrb.mxu1 %v462_v38  ;;  %v563_v37 = vunpack.c.l.bf16 %v316_v30  ;;  %v564_v38 = vunpack.c.h.bf16 %v316_v30  ;;  %v227_v30 = vld [vmem:[%s1843_s5 + $0xf0] sm:$0xff] }
 0x1be   :  { %788 = vmatpush.msra.mxu2 %v463_v41  ;;  %808 = vmatpush.msra.mxu3 %v464_v42  ;;  %v545_v41 = vunpack.c.l.bf16 %v307_v33  ;;  %v546_v42 = vunpack.c.h.bf16 %v307_v33  ;;  %v228_v33 = vld [vmem:[%s1843_s5 + $0xf8] sm:$0xff] }
 0x1bf   :  { %749 = vmatpush.msrb.mxu0 %v445_v44  ;;  %769 = vmatpush.msrb.mxu1 %v446_v45  ;;  %v547_v44 = vunpack.c.l.bf16 %v308_v36  ;;  %v548_v45 = vunpack.c.h.bf16 %v308_v36  ;;  %v219_v36 = vld [vmem:[%s1843_s5 + $0xb0] sm:$0xff] }
 0x1c0   :  { %789 = vmatpush.msra.mxu2 %v447_v47  ;;  %809 = vmatpush.msra.mxu3 %v448_v48  ;;  %v529_v47 = vunpack.c.l.bf16 %v299_v39  ;;  %v530_v48 = vunpack.c.h.bf16 %v299_v39  ;;  %v220_v39 = vld [vmem:[%s1843_s5 + $0xb8] sm:$0xff] }
 0x1c1   :  { %750 = vmatpush.msrb.mxu0 %v429_v50  ;;  %770 = vmatpush.msrb.mxu1 %v430_v51  ;;  %v531_v50 = vunpack.c.l.bf16 %v300_v43  ;;  %v532_v51 = vunpack.c.h.bf16 %v300_v43  ;;  %v211_v43 = vld [vmem:[%s1843_s5 + $0x70] sm:$0xff] }
 0x1c2   :  { %790 = vmatpush.msra.mxu2 %v431_v53  ;;  %810 = vmatpush.msra.mxu3 %v432_v54  ;;  %v513_v53 = vunpack.c.l.bf16 %v291_v46  ;;  %v514_v54 = vunpack.c.h.bf16 %v291_v46  ;;  %v212_v46 = vld [vmem:[%s1843_s5 + $0x78] sm:$0xff] }
 0x1c3   :  { %751 = vmatpush.msrb.mxu0 %v413_v56  ;;  %771 = vmatpush.msrb.mxu1 %v414_v57  ;;  %v515_v56 = vunpack.c.l.bf16 %v292_v49  ;;  %v516_v57 = vunpack.c.h.bf16 %v292_v49  ;;  %v203_v49 = vld [vmem:[%s1843_s5 + $0x30] sm:$0xff] }
 0x1c4   :  { %791 = vmatpush.msra.mxu2 %v415_v40  ;;  %811 = vmatpush.msra.mxu3 %v416_v60  ;;  %v497_v40 = vunpack.c.l.bf16 %v283_v52  ;;  %v498_v60 = vunpack.c.h.bf16 %v283_v52  ;;  %v204_v52 = vld [vmem:[%s1843_s5 + $0x38] sm:$0xff] }
 0x1c5   :  { %752 = vmatpush.msrb.mxu0 %v397_v62  ;;  %772 = vmatpush.msrb.mxu1 %v398_v63  ;;  %v499_v62 = vunpack.c.l.bf16 %v284_v55  ;;  %v500_v63 = vunpack.c.h.bf16 %v284_v55  ;;  %v337_v55 = vunpack.c.l.bf16 %v203_v49 }
 0x1c6   :  { %792 = vmatpush.msra.mxu2 %v399_v1  ;;  %812 = vmatpush.msra.mxu3 %v400_v2  ;;  %v481_v1 = vunpack.c.l.bf16 %v275_v58  ;;  %v482_v2 = vunpack.c.h.bf16 %v275_v58  ;;  %v340_v58 = vunpack.c.h.bf16 %v204_v52 }
 0x1c7   :  { %753 = vmatpush.msrb.mxu0 %v381_v3  ;;  %773 = vmatpush.msrb.mxu1 %v382_v4  ;;  %v483_v3 = vunpack.c.l.bf16 %v276_v61  ;;  %v484_v4 = vunpack.c.h.bf16 %v276_v61 }
 0x1c8   :  { %793 = vmatpush.msra.mxu2 %v383_v6  ;;  %813 = vmatpush.msra.mxu3 %v384_v7  ;;  %v465_v6 = vunpack.c.l.bf16 %v267_v0  ;;  %v466_v7 = vunpack.c.h.bf16 %v267_v0 }
 0x1c9   :  { %754 = vmatpush.msrb.mxu0 %v365_v9  ;;  %774 = vmatpush.msrb.mxu1 %v366_v10  ;;  %v467_v9 = vunpack.c.l.bf16 %v268_v23  ;;  %v468_v10 = vunpack.c.h.bf16 %v268_v23 }
 0x1ca   :  { %794 = vmatpush.msra.mxu2 %v367_v12  ;;  %814 = vmatpush.msra.mxu3 %v368_v13  ;;  %v449_v12 = vunpack.c.l.bf16 %v259_v5  ;;  %v450_v13 = vunpack.c.h.bf16 %v259_v5 }
 0x1cb   :  { %755 = vmatpush.msrb.mxu0 %v349_v15  ;;  %775 = vmatpush.msrb.mxu1 %v350_v16  ;;  %v451_v15 = vunpack.c.l.bf16 %v260_v8  ;;  %v452_v16 = vunpack.c.h.bf16 %v260_v8 }
 0x1cc   :  { %795 = vmatpush.msra.mxu2 %v351_v18  ;;  %815 = vmatpush.msra.mxu3 %v352_v19  ;;  %v433_v18 = vunpack.c.l.bf16 %v251_v11  ;;  %v434_v19 = vunpack.c.h.bf16 %v251_v11 }
 0x1cd   :  { %756 = vmatpush.msrb.mxu0 %v333_v20  ;;  %776 = vmatpush.msrb.mxu1 %v334_v21  ;;  %v244_v20 = vld [vmem:[%s1843_s5 + $0x178] sm:$0xff]  ;;  %v435_v21 = vunpack.c.l.bf16 %v252_v14 }
 0x1ce   :  { %796 = vmatpush.msra.mxu2 %v335_v22  ;;  %816 = vmatpush.msra.mxu3 %v336_v24  ;;  %v436_v22 = vunpack.c.h.bf16 %v252_v14  ;;  %v235_v24 = vld [vmem:[%s1843_s5 + $0x130] sm:$0xff] }
 0x1cf   :  { %757 = vmatmul.f32.vlgmr.msrb.gmra.mxu0 %v1521_v59  ;;  %777 = vmatmul.f32.vlgmr.msrb.gmra.mxu1 %v1521_v59 }
 0x1d0   :  { %797 = vmatmul.f32.vlgmr.msra.gmra.mxu2 %v1521_v59  ;;  %817 = vmatmul.f32.vlgmr.msra.gmra.mxu3 %v1521_v59 }
 0x1d1   :  { %821 = vmatpush.msra.mxu0 %v577_v28  ;;  %841 = vmatpush.msra.mxu1 %v578_v29  ;;  %v419_v28 = vunpack.c.l.bf16 %v244_v20  ;;  %v420_v29 = vunpack.c.h.bf16 %v244_v20 }
 0x1d2   :  { %861 = vmatpush.msrb.mxu2 %v579_v31  ;;  %881 = vmatpush.msrb.mxu3 %v580_v32  ;;  %v401_v31 = vunpack.c.l.bf16 %v235_v24  ;;  %v402_v32 = vunpack.c.h.bf16 %v235_v24 }
 0x1d3   :  { %822 = vmatpush.msra.mxu0 %v561_v34  ;;  %842 = vmatpush.msra.mxu1 %v562_v35  ;;  %v403_v34 = vunpack.c.l.bf16 %v236_v27  ;;  %v404_v35 = vunpack.c.h.bf16 %v236_v27 }
 0x1d4   :  { %862 = vmatpush.msrb.mxu2 %v563_v37  ;;  %882 = vmatpush.msrb.mxu3 %v564_v38  ;;  %v385_v37 = vunpack.c.l.bf16 %v227_v30  ;;  %v386_v38 = vunpack.c.h.bf16 %v227_v30  ;;  %v985_v30 = vld [vmem:[%s1846_s8 + $0x30] sm:$0xff] }
 0x1d5   :  { %823 = vmatpush.msra.mxu0 %v545_v41  ;;  %843 = vmatpush.msra.mxu1 %v546_v42  ;;  %v387_v41 = vunpack.c.l.bf16 %v228_v33  ;;  %v388_v42 = vunpack.c.h.bf16 %v228_v33  ;;  %v982_v33 = vld [vmem:[%s1846_s8 + $0x18] sm:$0xff] }
 0x1d6   :  { %863 = vmatpush.msrb.mxu2 %v547_v44  ;;  %883 = vmatpush.msrb.mxu3 %v548_v45  ;;  %v369_v44 = vunpack.c.l.bf16 %v219_v36  ;;  %v370_v45 = vunpack.c.h.bf16 %v219_v36  ;;  %v979_v36 = vld [vmem:[%s1846_s8] sm:$0xff] }
 0x1d7   :  { %824 = vmatpush.msra.mxu0 %v529_v47  ;;  %844 = vmatpush.msra.mxu1 %v530_v48  ;;  %v371_v47 = vunpack.c.l.bf16 %v220_v39  ;;  %v372_v48 = vunpack.c.h.bf16 %v220_v39  ;;  %v1062_v39 = vld [vmem:[%s1848_s10 + $0x68] sm:$0xff] }
 0x1d8   :  { %864 = vmatpush.msrb.mxu2 %v531_v50  ;;  %884 = vmatpush.msrb.mxu3 %v532_v51  ;;  %v353_v50 = vunpack.c.l.bf16 %v211_v43  ;;  %v354_v51 = vunpack.c.h.bf16 %v211_v43  ;;  %v1060_v43 = vld [vmem:[%s1848_s10 + $0x58] sm:$0xff] }
 0x1d9   :  { %825 = vmatpush.msra.mxu0 %v513_v53  ;;  %845 = vmatpush.msra.mxu1 %v514_v54  ;;  %v355_v53 = vunpack.c.l.bf16 %v212_v46  ;;  %v356_v54 = vunpack.c.h.bf16 %v212_v46 }
 0x1da   :  { %865 = vmatpush.msrb.mxu2 %v515_v56  ;;  %885 = vmatpush.msrb.mxu3 %v516_v57  ;;  %v338_v56 = vunpack.c.h.bf16 %v203_v49  ;;  %v339_v57 = vunpack.c.l.bf16 %v204_v52  ;;  %v1059_v52 = vld [vmem:[%s1848_s10 + $0x50] sm:$0xff] }
 0x1db   :  { %826 = vmatpush.msra.mxu0 %v497_v40  ;;  %846 = vmatpush.msra.mxu1 %v498_v60 }
 0x1dc   :  { %866 = vmatpush.msrb.mxu2 %v499_v62  ;;  %886 = vmatpush.msrb.mxu3 %v500_v63 }
 0x1dd   :  { %827 = vmatpush.msra.mxu0 %v481_v1  ;;  %847 = vmatpush.msra.mxu1 %v482_v2 }
 0x1de   :  { %867 = vmatpush.msrb.mxu2 %v483_v3  ;;  %887 = vmatpush.msrb.mxu3 %v484_v4 }
 0x1df   :  { %828 = vmatpush.msra.mxu0 %v465_v6  ;;  %848 = vmatpush.msra.mxu1 %v466_v7 }
 0x1e0   :  { %868 = vmatpush.msrb.mxu2 %v467_v9  ;;  %888 = vmatpush.msrb.mxu3 %v468_v10 }
 0x1e1   :  { %829 = vmatpush.msra.mxu0 %v449_v12  ;;  %849 = vmatpush.msra.mxu1 %v450_v13 }
 0x1e2   :  { %869 = vmatpush.msrb.mxu2 %v451_v15  ;;  %889 = vmatpush.msrb.mxu3 %v452_v16 }
 0x1e3   :  { %830 = vmatpush.msra.mxu0 %v433_v18  ;;  %850 = vmatpush.msra.mxu1 %v434_v19 }
 0x1e4   :  { %870 = vmatpush.msrb.mxu2 %v435_v21  ;;  %890 = vmatpush.msrb.mxu3 %v436_v22 }
 0x1e5   :  { %831 = vmatpush.msra.mxu0 %v417_v25  ;;  %851 = vmatpush.msra.mxu1 %v418_v26  ;;  %v933_v25 = vld [vmem:[%s1844_s6] sm:$0xff] }
 0x1e6   :  { %871 = vmatpush.msrb.mxu2 %v419_v28  ;;  %891 = vmatpush.msrb.mxu3 %v420_v29  ;;  %v971_v28 = vld [vmem:[%s1845_s7] sm:$0xff]  ;;  %v986_v29 = vld [vmem:[%s1846_s8 + $0x38] sm:$0xff] }
 0x1e7   :  { %832 = vmatpush.msra.mxu0 %v401_v31  ;;  %852 = vmatpush.msra.mxu1 %v402_v32  ;;  %v984_v31 = vld [vmem:[%s1846_s8 + $0x28] sm:$0xff]  ;;  %v983_v32 = vld [vmem:[%s1846_s8 + $0x20] sm:$0xff] }
 0x1e8   :  { %872 = vmatpush.msrb.mxu2 %v403_v34  ;;  %892 = vmatpush.msrb.mxu3 %v404_v35  ;;  %v981_v34 = vld [vmem:[%s1846_s8 + $0x10] sm:$0xff]  ;;  %v980_v35 = vld [vmem:[%s1846_s8 + $0x8] sm:$0xff] }
 0x1e9   :  { %833 = vmatpush.msra.mxu0 %v385_v37  ;;  %853 = vmatpush.msra.mxu1 %v386_v38  ;;  %v1064_v37 = vld [vmem:[%s1848_s10 + $0x78] sm:$0xff]  ;;  %v1063_v38 = vld [vmem:[%s1848_s10 + $0x70] sm:$0xff] }
 0x1ea   :  { %873 = vmatpush.msrb.mxu2 %v387_v41  ;;  %893 = vmatpush.msrb.mxu3 %v388_v42  ;;  %v1061_v42 = vld [vmem:[%s1848_s10 + $0x60] sm:$0xff] }
 0x1eb   :  { %834 = vmatpush.msra.mxu0 %v369_v44  ;;  %854 = vmatpush.msra.mxu1 %v370_v45 }
 0x1ec   :  { %874 = vmatpush.msrb.mxu2 %v371_v47  ;;  %894 = vmatpush.msrb.mxu3 %v372_v48 }
 0x1ed   :  { %835 = vmatpush.msra.mxu0 %v353_v50  ;;  %855 = vmatpush.msra.mxu1 %v354_v51 }
 0x1ee   :  { %875 = vmatpush.msrb.mxu2 %v355_v53  ;;  %895 = vmatpush.msrb.mxu3 %v356_v54  ;;  %v1058_v53 = vld [vmem:[%s1848_s10 + $0x48] sm:$0xff]  ;;  %v1057_v54 = vld [vmem:[%s1848_s10 + $0x40] sm:$0xff] }
 0x1ef   :  { %836 = vmatpush.msra.mxu0 %v337_v55  ;;  %856 = vmatpush.msra.mxu1 %v338_v56  ;;  %v1056_v55 = vld [vmem:[%s1848_s10 + $0x38] sm:$0xff]  ;;  %v1055_v56 = vld [vmem:[%s1848_s10 + $0x30] sm:$0xff] }
 0x1f0   :  { %876 = vmatpush.msrb.mxu2 %v339_v57  ;;  %896 = vmatpush.msrb.mxu3 %v340_v58  ;;  %v1054_v57 = vld [vmem:[%s1848_s10 + $0x28] sm:$0xff]  ;;  %v1053_v58 = vld [vmem:[%s1848_s10 + $0x20] sm:$0xff] }
 0x1f1   :  { %837 = vmatmul.f32.vlgmr.msra.gmra.mxu0 %v1521_v59  ;;  %857 = vmatmul.f32.vlgmr.msra.gmra.mxu1 %v1521_v59 }
 0x1f2   :  { %877 = vmatmul.f32.vlgmr.msrb.gmra.mxu2 %v1521_v59  ;;  %897 = vmatmul.f32.vlgmr.msrb.gmra.mxu3 %v1521_v59 }
 0x1f3   :  { %1023 = vmatpush.msra.mxu2 %v986_v29  ;;  %1003 = vmatpush.msrb.mxu1 %v985_v30 }
 0x1f4   :  { %1069 = vmatpush.msra.mxu3 %v1064_v37 }
 0x1f5   :  { %1024 = vmatpush.msra.mxu2 %v984_v31  ;;  %1004 = vmatpush.msrb.mxu1 %v983_v32 }
 0x1f6   :  { %1070 = vmatpush.msra.mxu3 %v1063_v38 }
 0x1f7   :  { %1025 = vmatpush.msra.mxu2 %v982_v33  ;;  %1005 = vmatpush.msrb.mxu1 %v981_v34 }
 0x1f8   :  { %1071 = vmatpush.msra.mxu3 %v1062_v39 }
 0x1f9   :  { %1026 = vmatpush.msra.mxu2 %v980_v35  ;;  %1006 = vmatpush.msrb.mxu1 %v979_v36 }
 0x1fa   :  { %1072 = vmatpush.msra.mxu3 %v1061_v42 }
 0x1fc   :  { %1073 = vmatpush.msra.mxu3 %v1060_v43 }
 0x1fe   :  { %1074 = vmatpush.msra.mxu3 %v1059_v52 }
 0x200   :  { %1075 = vmatpush.msra.mxu3 %v1058_v53 }
 0x202   :  { %1076 = vmatpush.msra.mxu3 %v1057_v54 }
 0x204   :  { %1077 = vmatpush.msra.mxu3 %v1056_v55 }
 0x206   :  { %1078 = vmatpush.msra.mxu3 %v1055_v56 }
 0x208   :  { %1079 = vmatpush.msra.mxu3 %v1054_v57 }
 0x20a   :  { %1080 = vmatpush.msra.mxu3 %v1053_v58 }
 0x228   :  { %v618_v40 = vpop.f32.mrf.mxu1  ;;  %v598_v62 = vpop.f32.mrf.mxu0 }
 0x229   :  { %v902_v21 = vrot.slane %v618_v40, 4  ;;  %v1052_v40 = vld [vmem:[%s1848_s10 + $0x18] sm:$0xff] }
 0x22a   :  { %1081 = vmatpush.msra.mxu3 %v1052_v40 }
 0x22b   :  { %v925_v26 = vsel %vm158_vm2, %v598_v62, %v902_v21  ;;  %v1049_v62 = vld [vmem:[%s1848_s10] sm:$0xff] }
 0x22f   :  { %v658_v60 = vpop.f32.mrf.mxu3  ;;  %v638_v61 = vpop.f32.mrf.mxu2 }
 0x230   :  { %v905_v19 = vrot.slane %v658_v60, 4  ;;  %v1051_v60 = vld [vmem:[%s1848_s10 + $0x10] sm:$0xff] }
 0x231   :  { %1082 = vmatpush.msra.mxu3 %v1051_v60 }
 0x232   :  { %v698_v63 = vpop.f32.mrf.mxu1  ;;  %v678_v2 = vpop.f32.mrf.mxu0  ;;  %v926_v24 = vsel %vm158_vm2, %v638_v61, %v905_v19  ;;  %v1050_v61 = vld [vmem:[%s1848_s10 + $0x8] sm:$0xff]  ;;  %v1090_v19 = vld [vmem:[%s1850_s12] sm:$0xff] }
 0x233   :  { %v908_v17 = vrot.slane %v698_v63, 4  ;;  %1083 = vmatpush.msra.mxu3 %v1050_v61  ;;  %v1093_v63 = vld [vmem:[%s1850_s12 + $0x18] sm:$0xff] }
 0x234   :  { %1113 = vmatpush.msra.mxu1 %v1093_v63 }
 0x235   :  { %v927_v22 = vsel %vm158_vm2, %v678_v2, %v908_v17  ;;  %1084 = vmatpush.msra.mxu3 %v1049_v62 }
 0x239   :  { %v738_v0 = vpop.f32.mrf.mxu3  ;;  %v718_v1 = vpop.f32.mrf.mxu2 }
 0x23a   :  { %v911_v15 = vrot.slane %v738_v0, 4  ;;  %v1092_v0 = vld [vmem:[%s1850_s12 + $0x10] sm:$0xff] }
 0x23b   :  { %1114 = vmatpush.msra.mxu1 %v1092_v0 }
 0x23c   :  { %v928_v20 = vsel %vm158_vm2, %v718_v1, %v911_v15  ;;  %v1031_v1 = vld [vmem:[%s1847_s9] sm:$0xff] }
 0x24c   :  { %v778_v23 = vpop.f32.mrf.mxu1  ;;  %v758_v5 = vpop.f32.mrf.mxu0 }
 0x24d   :  { %v914_v13 = vrot.slane %v778_v23, 4 }
 0x24f   :  { %v929_v18 = vsel %vm158_vm2, %v758_v5, %v914_v13 }
 0x253   :  { %v818_v3 = vpop.f32.mrf.mxu3  ;;  %v798_v4 = vpop.f32.mrf.mxu2 }
 0x254   :  { %v917_v11 = vrot.slane %v818_v3, 4 }
 0x256   :  { %v930_v16 = vsel %vm158_vm2, %v798_v4, %v917_v11  ;;  %v1032_v4 = vld [vmem:[%s1847_s9 + $0x8] sm:$0xff] }
 0x26e   :  { %v858_v6 = vpop.f32.mrf.mxu1  ;;  %v838_v12 = vpop.f32.mrf.mxu0 }
 0x26f   :  { %v920_v8 = vrot.slane %v858_v6, 4 }
 0x271   :  { %v931_v14 = vsel %vm158_vm2, %v838_v12, %v920_v8 }
 0x275   :  { %v898_v7 = vpop.f32.mrf.mxu3  ;;  %v878_v10 = vpop.f32.mrf.mxu2 }
 0x276   :  { %v923_v9 = vrot.slane %v898_v7, 4 }
 0x278   :  { %v932_v59 = vsel %vm158_vm2, %v878_v10, %v923_v9 }
 0x279   :  { %946 = vmatpush.msrb.mxu0 %v932_v59 }
 0x27b   :  { %947 = vmatpush.msrb.mxu0 %v931_v14 }
 0x27d   :  { %948 = vmatpush.msrb.mxu0 %v930_v16 }
 0x27f   :  { %949 = vmatpush.msrb.mxu0 %v929_v18  ;;  %v1091_v18 = vld [vmem:[%s1850_s12 + $0x8] sm:$0xff]  ;;  %s1130_s12 = sshll.u32 %s1852_s14, 4  ;;  %s1131_s12 = int_to_ptr.hbm [resolvable:$true] %s1130_s12 }
 0x280   :  { %1115 = vmatpush.msra.mxu1 %v1091_v18 }
 0x281   :  { %950 = vmatpush.msrb.mxu0 %v928_v20  ;;  %v1157_v20 = vld [vmem:[%s1849_s11] ss:$0 sm:$0xff] }
 0x282   :  { %1116 = vmatpush.msra.mxu1 %v1090_v19 }
 0x283   :  { %951 = vmatpush.msrb.mxu0 %v927_v22 }
 0x285   :  { %952 = vmatpush.msrb.mxu0 %v926_v24 }
 0x287   :  { %953 = vmatpush.msrb.mxu0 %v925_v26 }
 0x288   :  { %1144 = vmatmul.msk.f32.vlgmr.msrb.gmra.mxu0 %vm934_vm6, %v933_v25  ;;  %v1158_v25 = vld [vmem:[%s1851_s13] ss:$0 sm:$0xff] }
 0x305   :  { %v955_v27 = vpop.f32.mrf.mxu0 }
 0x306   :  { %959 = vrot.lane.b32.xlu2 %v955_v27, %s1189_s24 }
 0x30e   :  { %963 = vrot.lane.b32.xlu2 %v955_v27, %s1190_s25 }
 0x316   :  { %967 = vrot.lane.b32.xlu2 %v955_v27, %s1191_s1 }
 0x31e   :  { %974 = vperm.xlu2 %1156, %v971_v28  }
 0x360   :  { %v960_v41 = vpop.permute.xlu2 %959 }
 0x361   :  { %v962_v46 = vmax.f32 %v955_v27, %v960_v41 }
 0x368   :  { %v964_v44 = vpop.permute.xlu2 %963 }
 0x369   :  { %v966_v47 = vmax.f32 %v962_v46, %v964_v44 }
 0x370   :  { %v968_v45 = vpop.permute.xlu2 %967 }
 0x371   :  { %v970_v48 = vmax.f32 %v966_v47, %v968_v45 }
 0x378   :  { %v975_v49 = vpop.permute.xlu2 %974 }
 0x379   :  { %v977_v50 = vadd.f32 %v975_v49, %v970_v48 }
 0x37b   :  { %v978_v51 = vmax.f32 %v977_v50, 0.0 }
 0x37d   :  { %1145 = vmatmul.msk.f32.vlgmr.msrb.gmra.mxu1 %vm987_vm7, %v978_v51  ;;  %1146 = vmatmul.msk.f32.vlgmr.msra.gmra.mxu2 %vm987_vm7, %v978_v51 }
 0x3fa   :  { %v1008_v2 = vpop.f32.mrf.mxu1 }
 0x3fb   :  { %v1033_v23 = vmul.f32 %v1031_v1, %v1008_v2 }
 0x3fd   :  { %v1035_v3 = vrot.slane %v1033_v23, 4 }
 0x3ff   :  { %v1036_v5 = vadd.f32 %v1035_v3, %v1033_v23 }
 0x400   :  { %v1028_v6 = vpop.f32.mrf.mxu2 }
 0x401   :  { %v1037_v7 = vrot.slane %v1036_v5, 2  ;;  %v1034_v8 = vmul.f32 %v1032_v4, %v1028_v6 }
 0x403   :  { %v1041_v9 = vrot.slane %v1034_v8, 4  ;;  %v1038_v10 = vadd.f32 %v1037_v7, %v1036_v5 }
 0x405   :  { %v1042_v11 = vadd.f32 %v1041_v9, %v1034_v8  ;;  %v1039_v12 = vrot.slane %v1038_v10, 1 }
 0x407   :  { %v1043_v59 = vrot.slane %v1042_v11, 2  ;;  %v1040_v15 = vadd.f32 %v1039_v12, %v1038_v10 }
 0x409   :  { %v1044_v13 = vadd.f32 %v1043_v59, %v1042_v11 }
 0x40b   :  { %v1045_v14 = vrot.slane %v1044_v13, 1 }
 0x40d   :  { %v1046_v16 = vadd.f32 %v1045_v14, %v1044_v13 }
 0x40f   :  { %v1048_v17 = vsel %vm1047_vm8, %v1040_v15, %v1046_v16 }
 0x410   :  { %1085 = vmatmul.f32.vlgmr.msra.gmra.mxu3 %v1048_v17 }
 0x493   :  { %v1086_v21 = vpop.f32.mrf.mxu3 }
 0x494   :  { %v1087_v22 = vadd.f32 %v1157_v20, %v1086_v21 }
 0x496   :  { %v1089_v24 = vmax.f32 %v1087_v22, 0.0 }
 0x498   :  { %1147 = vmatmul.msk.f32.vlgmr.msra.gmra.mxu1 %vm987_vm7, %v1089_v24 }
 0x515   :  { %v1118_v26 = vpop.f32.mrf.mxu1 }
 0x516   :  { %v1119_v27 = vadd.f32 %v1158_v25, %v1118_v26 }
 0x518   :  { %1122 = vst.msk [vmem:[#allocation2] sm:$0x3] %vm1121_vm9, %v1119_v27 }
 0x519   :  { %1133 = dma.vmem_to_hbm [thread:$0]  %s1129_s21, 32, %s1131_s12, [#allocation3]  }
 0x51a   :  { %1185 = dma.done.wait [#allocation3], 32  }
 0x51b   :  { %1186 = vsyncadd [#allocation3], 4294967264 }
 0x51c   :  { %1138 = vsyncpa [#allocation3], 1 }

</bundles_post_ra>
